<compile_context>
chip_gen: v7x
topology: tpu7x:2x2x1
jax: 0.10.0
libtpu: 0.0.40
codegen_flags: <defaults>
</compile_context>

<pallas_src>
import functools
import math

import jax
import jax.numpy as jnp
from jax.experimental import pallas as pl
from jax.experimental.pallas import tpu as pltpu


def _conv_im2col_matmul_kernel(w_ref, b_ref, x_ref, o_ref, patch_ref, *,
                               img_w, m_tile, cin, kh, kw, n_hblk):
    """One (batch, output-row-block) tile.

    w_ref:     (Cout, K)       VMEM bf16  K = KH*KW*Cin, row order (kh, kw, ci)
    b_ref:     (Cout, 1)       VMEM f32   bias with the +1.1 already folded in
    x_ref:     (Cin, Wpad)     VMEM bf16  full image, flattened H*W (+ lane pad)
    o_ref:     (Cout, m_tile)  VMEM f32   m_tile = ho_blk * W (full-width rows)
    patch_ref: (K, m_tile)     VMEM bf16  scratch: im2col patch for this tile
    """
    if n_hblk == 1:
        base = 0                                   # static offsets only
    else:
        # m_tile is a multiple of 128 whenever n_hblk > 1 (see _pick_ho_block).
        base = pl.multiple_of(pl.program_id(1) * m_tile, 128)

    # Build the im2col patch in VMEM (no HBM round trip).
    t = 0
    for dh in range(kh):
        for dw in range(kw):
            patch_ref[pl.ds(t * cin, cin), :] = (
                x_ref[:, pl.ds(base + dh * img_w + dw, m_tile)])
            t += 1

    # One fat MXU matmul: (Cout, K) @ (K, m_tile), f32 accumulation,
    # with the bias(+1.1) epilogue fused.
    acc = jnp.dot(w_ref[...], patch_ref[...], preferred_element_type=jnp.float32)
    o_ref[...] = (acc + b_ref[...]).astype(o_ref.dtype)


def _pick_ho_block(ho, w, target_lanes=1024):
    """Largest divisor d of `ho` with d*w <= target_lanes and d*w % 128 == 0."""
    cands = [d for d in range(1, ho + 1)
             if ho % d == 0 and d * w <= target_lanes and (d * w) % 128 == 0]
    return max(cands) if cands else ho


def conv2d_plus_const(x_nchw, w_oihw, bias, *, KH=5, KW=5,
                      target_lanes=1024, compute_dtype=jnp.bfloat16):
    """Conv2d(stride=1, VALID) then + 1.1 ; NCHW in / NCHW out (matches PyTorch)."""
    N, Cin, H, W = x_nchw.shape
    Cout = w_oihw.shape[0]
    Ho, Wo = H - KH + 1, W - KW + 1
    K = Cin * KH * KW

    ho_blk = _pick_ho_block(Ho, W, target_lanes)
    n_hblk = Ho // ho_blk
    m_tile = ho_blk * W                     # full-width output rows per grid step

    # Flattened image (layout plumbing only): pad the lane axis so every tap
    # window (max end index H*W + KW - 1) stays in bounds, rounded to 128 lanes.
    wpad = ((H * W + KW - 1 + 127) // 128) * 128
    x_flat = jnp.pad(x_nchw.reshape(N, Cin, H * W),
                     ((0, 0), (0, 0), (0, wpad - H * W))).astype(compute_dtype)

    # Weight rows match the patch's K ordering: K index = (kh*KW + kw)*Cin + ci.
    w2 = jnp.transpose(w_oihw, (0, 2, 3, 1)).reshape(Cout, K).astype(compute_dtype)
    # Fold `v2 = v1 - (-1.1)` into the bias (free at trace time).
    b2 = (bias.astype(jnp.float32) + jnp.float32(1.1)).reshape(Cout, 1)

    kernel = functools.partial(
        _conv_im2col_matmul_kernel,
        img_w=W, m_tile=m_tile, cin=Cin, kh=KH, kw=KW, n_hblk=n_hblk)

    out_flat = pl.pallas_call(
        kernel,
        out_shape=jax.ShapeDtypeStruct((N, Cout, Ho * W), jnp.float32),
        grid_spec=pltpu.PrefetchScalarGridSpec(
            num_scalar_prefetch=0,
            grid=(N, n_hblk),
            in_specs=[
                # Weight / bias: constant block index -> fetched once.
                pl.BlockSpec((Cout, K), lambda n, j: (0, 0)),
                pl.BlockSpec((Cout, 1), lambda n, j: (0, 0)),
                # Raw image slab: constant across j -> not re-fetched per row block.
                pl.BlockSpec((None, Cin, wpad), lambda n, j: (n, 0, 0)),
            ],
            out_specs=pl.BlockSpec((None, Cout, m_tile), lambda n, j: (n, 0, j)),
            scratch_shapes=[pltpu.VMEM((K, m_tile), compute_dtype)],
        ),
        compiler_params=pltpu.CompilerParams(
            dimension_semantics=("parallel", "parallel")),
    )(w2, b2, x_flat)

    # (N, Cout, Ho*W) -> (N, Cout, Ho, W) -> drop the KW-1 garbage columns.
    return out_flat.reshape(N, Cout, Ho, W)[:, :, :, :Wo]


if __name__ == "__main__":
    key = jax.random.PRNGKey(0)
    k_x, k_w, k_b, k_x2 = jax.random.split(key, 4)

    # Conv2d(64, 64, 5x5) fixes Cin = Cout = 64.
    Cin = Cout = 64
    KH = KW = 5

    # Deterministic synthetic parameters (roughly PyTorch's default init scale).
    fan_in = Cin * KH * KW
    bound = 1.0 / math.sqrt(fan_in)
    w = jax.random.uniform(k_w, (Cout, Cin, KH, KW), jnp.float32, -bound, bound)
    b = jax.random.uniform(k_b, (Cout,), jnp.float32, -bound, bound)

    fn = jax.jit(functools.partial(conv2d_plus_const, KH=KH, KW=KW))

    def reference(x):
        conv = jax.lax.conv_general_dilated(
            x, w, window_strides=(1, 1), padding="VALID",
            dimension_numbers=("NCHW", "OIHW", "NCHW"),
            precision=jax.lax.Precision.HIGHEST)
        return conv + b.reshape(1, Cout, 1, 1) + 1.1

    # Small test shape (batch=2, 16x16): single row-block path.
    x_small = jax.random.normal(k_x, (2, Cin, 16, 16), dtype=jnp.float32)
    out_small = fn(x_small, w, b)
    jax.block_until_ready(out_small)
    ref_small = reference(x_small)
    assert out_small.shape == ref_small.shape == (2, Cout, 12, 12)
    err_small = float(jnp.max(jnp.abs(out_small - ref_small)))
    assert err_small < 2e-2, f"small-shape max abs err {err_small}"

    # Original module spec shape (1, 64, 64, 64): exercises the M-tiled grid.
    x_spec = jax.random.normal(k_x2, (1, Cin, 64, 64), dtype=jnp.float32)
    out_spec = fn(x_spec, w, b)
    jax.block_until_ready(out_spec)
    ref_spec = reference(x_spec)
    assert out_spec.shape == ref_spec.shape == (1, Cout, 60, 60)
    err_spec = float(jnp.max(jnp.abs(out_spec - ref_spec)))
    assert err_spec < 2e-2, f"spec-shape max abs err {err_spec}"

    print("KERNEL_OK")
</pallas_src>

<mosaic_0001>
module attributes {stable_mosaic.version = 11 : i64} {
  func.func @_conv_im2col_matmul_kernel(%arg0: i32, %arg1: i32, %arg2: memref<64x1600xbf16, #tpu.memory_space<vmem>>, %arg3: memref<64x1xf32, #tpu.memory_space<vmem>>, %arg4: memref<1x64x384xbf16, #tpu.memory_space<vmem>>, %arg5: memref<1x64x192xf32, #tpu.memory_space<vmem>>, %arg6: memref<1600x192xbf16, #tpu.memory_space<vmem>>) attributes {dimension_semantics = [#tpu.dimension_semantics<parallel>, #tpu.dimension_semantics<parallel>], iteration_bounds = array<i64: 2, 1>, scalar_prefetch = 0 : i64, scratch_operands = 1 : i64, tpu.core_type = #tpu.core_type<tc>, window_params = [{pipeline_mode = #tpu.pipeline_mode<synchronous>, transform_indices = @transform_0, window_bounds = array<i64: 64, 1600>}, {pipeline_mode = #tpu.pipeline_mode<synchronous>, transform_indices = @transform_1, window_bounds = array<i64: 64, 1>}, {transform_indices = @transform_2, window_bounds = array<i64: 1, 64, 384>}, {transform_indices = @transform_3, window_bounds = array<i64: 1, 64, 192>}]} {
    %c0 = arith.constant 0 : index
    %c0_0 = arith.constant 0 : index
    %c0_1 = arith.constant 0 : index
    %0 = vector.load %arg4[%c0, %c0_0, %c0_1] : memref<1x64x384xbf16, #tpu.memory_space<vmem>>, vector<1x64x192xbf16>
    %1 = vector.shape_cast %0 : vector<1x64x192xbf16> to vector<64x192xbf16>
    %c0_2 = arith.constant 0 : index
    %c0_3 = arith.constant 0 : index
    %2 = vector.load %arg6[%c0_2, %c0_3] : memref<1600x192xbf16, #tpu.memory_space<vmem>>, vector<64x192xbf16>
    tpu.vector_store %arg6[%c0_2, %c0_3], %1 {strides = array<i32>} : memref<1600x192xbf16, #tpu.memory_space<vmem>>, vector<64x192xbf16>,
    %c0_4 = arith.constant 0 : index
    %c0_5 = arith.constant 0 : index
    %c1 = arith.constant 1 : index
    %3 = vector.load %arg4[%c0_4, %c0_5, %c1] : memref<1x64x384xbf16, #tpu.memory_space<vmem>>, vector<1x64x192xbf16>
    %4 = vector.shape_cast %3 : vector<1x64x192xbf16> to vector<64x192xbf16>
    %c64 = arith.constant 64 : index
    %c0_6 = arith.constant 0 : index
    %5 = vector.load %arg6[%c64, %c0_6] : memref<1600x192xbf16, #tpu.memory_space<vmem>>, vector<64x192xbf16>
    tpu.vector_store %arg6[%c64, %c0_6], %4 {strides = array<i32>} : memref<1600x192xbf16, #tpu.memory_space<vmem>>, vector<64x192xbf16>,
    %c0_7 = arith.constant 0 : index
    %c0_8 = arith.constant 0 : index
    %c2 = arith.constant 2 : index
    %6 = vector.load %arg4[%c0_7, %c0_8, %c2] : memref<1x64x384xbf16, #tpu.memory_space<vmem>>, vector<1x64x192xbf16>
    %7 = vector.shape_cast %6 : vector<1x64x192xbf16> to vector<64x192xbf16>
    %c128 = arith.constant 128 : index
    %c0_9 = arith.constant 0 : index
    %8 = vector.load %arg6[%c128, %c0_9] : memref<1600x192xbf16, #tpu.memory_space<vmem>>, vector<64x192xbf16>
    tpu.vector_store %arg6[%c128, %c0_9], %7 {strides = array<i32>} : memref<1600x192xbf16, #tpu.memory_space<vmem>>, vector<64x192xbf16>,
    %c0_10 = arith.constant 0 : index
    %c0_11 = arith.constant 0 : index
    %c3 = arith.constant 3 : index
    %9 = vector.load %arg4[%c0_10, %c0_11, %c3] : memref<1x64x384xbf16, #tpu.memory_space<vmem>>, vector<1x64x192xbf16>
    %10 = vector.shape_cast %9 : vector<1x64x192xbf16> to vector<64x192xbf16>
    %c192 = arith.constant 192 : index
    %c0_12 = arith.constant 0 : index
    %11 = vector.load %arg6[%c192, %c0_12] : memref<1600x192xbf16, #tpu.memory_space<vmem>>, vector<64x192xbf16>
    tpu.vector_store %arg6[%c192, %c0_12], %10 {strides = array<i32>} : memref<1600x192xbf16, #tpu.memory_space<vmem>>, vector<64x192xbf16>,
    %c0_13 = arith.constant 0 : index
    %c0_14 = arith.constant 0 : index
    %c4 = arith.constant 4 : index
    %12 = vector.load %arg4[%c0_13, %c0_14, %c4] : memref<1x64x384xbf16, #tpu.memory_space<vmem>>, vector<1x64x192xbf16>
    %13 = vector.shape_cast %12 : vector<1x64x192xbf16> to vector<64x192xbf16>
    %c256 = arith.constant 256 : index
    %c0_15 = arith.constant 0 : index
    %14 = vector.load %arg6[%c256, %c0_15] : memref<1600x192xbf16, #tpu.memory_space<vmem>>, vector<64x192xbf16>
    tpu.vector_store %arg6[%c256, %c0_15], %13 {strides = array<i32>} : memref<1600x192xbf16, #tpu.memory_space<vmem>>, vector<64x192xbf16>,
    %c0_16 = arith.constant 0 : index
    %c0_17 = arith.constant 0 : index
    %c16 = arith.constant 16 : index
    %15 = vector.load %arg4[%c0_16, %c0_17, %c16] : memref<1x64x384xbf16, #tpu.memory_space<vmem>>, vector<1x64x192xbf16>
    %16 = vector.shape_cast %15 : vector<1x64x192xbf16> to vector<64x192xbf16>
    %c320 = arith.constant 320 : index
    %c0_18 = arith.constant 0 : index
    %17 = vector.load %arg6[%c320, %c0_18] : memref<1600x192xbf16, #tpu.memory_space<vmem>>, vector<64x192xbf16>
    tpu.vector_store %arg6[%c320, %c0_18], %16 {strides = array<i32>} : memref<1600x192xbf16, #tpu.memory_space<vmem>>, vector<64x192xbf16>,
    %c0_19 = arith.constant 0 : index
    %c0_20 = arith.constant 0 : index
    %c17 = arith.constant 17 : index
    %18 = vector.load %arg4[%c0_19, %c0_20, %c17] : memref<1x64x384xbf16, #tpu.memory_space<vmem>>, vector<1x64x192xbf16>
    %19 = vector.shape_cast %18 : vector<1x64x192xbf16> to vector<64x192xbf16>
    %c384 = arith.constant 384 : index
    %c0_21 = arith.constant 0 : index
    %20 = vector.load %arg6[%c384, %c0_21] : memref<1600x192xbf16, #tpu.memory_space<vmem>>, vector<64x192xbf16>
    tpu.vector_store %arg6[%c384, %c0_21], %19 {strides = array<i32>} : memref<1600x192xbf16, #tpu.memory_space<vmem>>, vector<64x192xbf16>,
    %c0_22 = arith.constant 0 : index
    %c0_23 = arith.constant 0 : index
    %c18 = arith.constant 18 : index
    %21 = vector.load %arg4[%c0_22, %c0_23, %c18] : memref<1x64x384xbf16, #tpu.memory_space<vmem>>, vector<1x64x192xbf16>
    %22 = vector.shape_cast %21 : vector<1x64x192xbf16> to vector<64x192xbf16>
    %c448 = arith.constant 448 : index
    %c0_24 = arith.constant 0 : index
    %23 = vector.load %arg6[%c448, %c0_24] : memref<1600x192xbf16, #tpu.memory_space<vmem>>, vector<64x192xbf16>
    tpu.vector_store %arg6[%c448, %c0_24], %22 {strides = array<i32>} : memref<1600x192xbf16, #tpu.memory_space<vmem>>, vector<64x192xbf16>,
    %c0_25 = arith.constant 0 : index
    %c0_26 = arith.constant 0 : index
    %c19 = arith.constant 19 : index
    %24 = vector.load %arg4[%c0_25, %c0_26, %c19] : memref<1x64x384xbf16, #tpu.memory_space<vmem>>, vector<1x64x192xbf16>
    %25 = vector.shape_cast %24 : vector<1x64x192xbf16> to vector<64x192xbf16>
    %c512 = arith.constant 512 : index
    %c0_27 = arith.constant 0 : index
    %26 = vector.load %arg6[%c512, %c0_27] : memref<1600x192xbf16, #tpu.memory_space<vmem>>, vector<64x192xbf16>
    tpu.vector_store %arg6[%c512, %c0_27], %25 {strides = array<i32>} : memref<1600x192xbf16, #tpu.memory_space<vmem>>, vector<64x192xbf16>,
    %c0_28 = arith.constant 0 : index
    %c0_29 = arith.constant 0 : index
    %c20 = arith.constant 20 : index
    %27 = vector.load %arg4[%c0_28, %c0_29, %c20] : memref<1x64x384xbf16, #tpu.memory_space<vmem>>, vector<1x64x192xbf16>
    %28 = vector.shape_cast %27 : vector<1x64x192xbf16> to vector<64x192xbf16>
    %c576 = arith.constant 576 : index
    %c0_30 = arith.constant 0 : index
    %29 = vector.load %arg6[%c576, %c0_30] : memref<1600x192xbf16, #tpu.memory_space<vmem>>, vector<64x192xbf16>
    tpu.vector_store %arg6[%c576, %c0_30], %28 {strides = array<i32>} : memref<1600x192xbf16, #tpu.memory_space<vmem>>, vector<64x192xbf16>,
    %c0_31 = arith.constant 0 : index
    %c0_32 = arith.constant 0 : index
    %c32 = arith.constant 32 : index
    %30 = vector.load %arg4[%c0_31, %c0_32, %c32] : memref<1x64x384xbf16, #tpu.memory_space<vmem>>, vector<1x64x192xbf16>
    %31 = vector.shape_cast %30 : vector<1x64x192xbf16> to vector<64x192xbf16>
    %c640 = arith.constant 640 : index
    %c0_33 = arith.constant 0 : index
    %32 = vector.load %arg6[%c640, %c0_33] : memref<1600x192xbf16, #tpu.memory_space<vmem>>, vector<64x192xbf16>
    tpu.vector_store %arg6[%c640, %c0_33], %31 {strides = array<i32>} : memref<1600x192xbf16, #tpu.memory_space<vmem>>, vector<64x192xbf16>,
    %c0_34 = arith.constant 0 : index
    %c0_35 = arith.constant 0 : index
    %c33 = arith.constant 33 : index
    %33 = vector.load %arg4[%c0_34, %c0_35, %c33] : memref<1x64x384xbf16, #tpu.memory_space<vmem>>, vector<1x64x192xbf16>
    %34 = vector.shape_cast %33 : vector<1x64x192xbf16> to vector<64x192xbf16>
    %c704 = arith.constant 704 : index
    %c0_36 = arith.constant 0 : index
    %35 = vector.load %arg6[%c704, %c0_36] : memref<1600x192xbf16, #tpu.memory_space<vmem>>, vector<64x192xbf16>
    tpu.vector_store %arg6[%c704, %c0_36], %34 {strides = array<i32>} : memref<1600x192xbf16, #tpu.memory_space<vmem>>, vector<64x192xbf16>,
    %c0_37 = arith.constant 0 : index
    %c0_38 = arith.constant 0 : index
    %c34 = arith.constant 34 : index
    %36 = vector.load %arg4[%c0_37, %c0_38, %c34] : memref<1x64x384xbf16, #tpu.memory_space<vmem>>, vector<1x64x192xbf16>
    %37 = vector.shape_cast %36 : vector<1x64x192xbf16> to vector<64x192xbf16>
    %c768 = arith.constant 768 : index
    %c0_39 = arith.constant 0 : index
    %38 = vector.load %arg6[%c768, %c0_39] : memref<1600x192xbf16, #tpu.memory_space<vmem>>, vector<64x192xbf16>
    tpu.vector_store %arg6[%c768, %c0_39], %37 {strides = array<i32>} : memref<1600x192xbf16, #tpu.memory_space<vmem>>, vector<64x192xbf16>,
    %c0_40 = arith.constant 0 : index
    %c0_41 = arith.constant 0 : index
    %c35 = arith.constant 35 : index
    %39 = vector.load %arg4[%c0_40, %c0_41, %c35] : memref<1x64x384xbf16, #tpu.memory_space<vmem>>, vector<1x64x192xbf16>
    %40 = vector.shape_cast %39 : vector<1x64x192xbf16> to vector<64x192xbf16>
    %c832 = arith.constant 832 : index
    %c0_42 = arith.constant 0 : index
    %41 = vector.load %arg6[%c832, %c0_42] : memref<1600x192xbf16, #tpu.memory_space<vmem>>, vector<64x192xbf16>
    tpu.vector_store %arg6[%c832, %c0_42], %40 {strides = array<i32>} : memref<1600x192xbf16, #tpu.memory_space<vmem>>, vector<64x192xbf16>,
    %c0_43 = arith.constant 0 : index
    %c0_44 = arith.constant 0 : index
    %c36 = arith.constant 36 : index
    %42 = vector.load %arg4[%c0_43, %c0_44, %c36] : memref<1x64x384xbf16, #tpu.memory_space<vmem>>, vector<1x64x192xbf16>
    %43 = vector.shape_cast %42 : vector<1x64x192xbf16> to vector<64x192xbf16>
    %c896 = arith.constant 896 : index
    %c0_45 = arith.constant 0 : index
    %44 = vector.load %arg6[%c896, %c0_45] : memref<1600x192xbf16, #tpu.memory_space<vmem>>, vector<64x192xbf16>
    tpu.vector_store %arg6[%c896, %c0_45], %43 {strides = array<i32>} : memref<1600x192xbf16, #tpu.memory_space<vmem>>, vector<64x192xbf16>,
    %c0_46 = arith.constant 0 : index
    %c0_47 = arith.constant 0 : index
    %c48 = arith.constant 48 : index
    %45 = vector.load %arg4[%c0_46, %c0_47, %c48] : memref<1x64x384xbf16, #tpu.memory_space<vmem>>, vector<1x64x192xbf16>
    %46 = vector.shape_cast %45 : vector<1x64x192xbf16> to vector<64x192xbf16>
    %c960 = arith.constant 960 : index
    %c0_48 = arith.constant 0 : index
    %47 = vector.load %arg6[%c960, %c0_48] : memref<1600x192xbf16, #tpu.memory_space<vmem>>, vector<64x192xbf16>
    tpu.vector_store %arg6[%c960, %c0_48], %46 {strides = array<i32>} : memref<1600x192xbf16, #tpu.memory_space<vmem>>, vector<64x192xbf16>,
    %c0_49 = arith.constant 0 : index
    %c0_50 = arith.constant 0 : index
    %c49 = arith.constant 49 : index
    %48 = vector.load %arg4[%c0_49, %c0_50, %c49] : memref<1x64x384xbf16, #tpu.memory_space<vmem>>, vector<1x64x192xbf16>
    %49 = vector.shape_cast %48 : vector<1x64x192xbf16> to vector<64x192xbf16>
    %c1024 = arith.constant 1024 : index
    %c0_51 = arith.constant 0 : index
    %50 = vector.load %arg6[%c1024, %c0_51] : memref<1600x192xbf16, #tpu.memory_space<vmem>>, vector<64x192xbf16>
    tpu.vector_store %arg6[%c1024, %c0_51], %49 {strides = array<i32>} : memref<1600x192xbf16, #tpu.memory_space<vmem>>, vector<64x192xbf16>,
    %c0_52 = arith.constant 0 : index
    %c0_53 = arith.constant 0 : index
    %c50 = arith.constant 50 : index
    %51 = vector.load %arg4[%c0_52, %c0_53, %c50] : memref<1x64x384xbf16, #tpu.memory_space<vmem>>, vector<1x64x192xbf16>
    %52 = vector.shape_cast %51 : vector<1x64x192xbf16> to vector<64x192xbf16>
    %c1088 = arith.constant 1088 : index
    %c0_54 = arith.constant 0 : index
    %53 = vector.load %arg6[%c1088, %c0_54] : memref<1600x192xbf16, #tpu.memory_space<vmem>>, vector<64x192xbf16>
    tpu.vector_store %arg6[%c1088, %c0_54], %52 {strides = array<i32>} : memref<1600x192xbf16, #tpu.memory_space<vmem>>, vector<64x192xbf16>,
    %c0_55 = arith.constant 0 : index
    %c0_56 = arith.constant 0 : index
    %c51 = arith.constant 51 : index
    %54 = vector.load %arg4[%c0_55, %c0_56, %c51] : memref<1x64x384xbf16, #tpu.memory_space<vmem>>, vector<1x64x192xbf16>
    %55 = vector.shape_cast %54 : vector<1x64x192xbf16> to vector<64x192xbf16>
    %c1152 = arith.constant 1152 : index
    %c0_57 = arith.constant 0 : index
    %56 = vector.load %arg6[%c1152, %c0_57] : memref<1600x192xbf16, #tpu.memory_space<vmem>>, vector<64x192xbf16>
    tpu.vector_store %arg6[%c1152, %c0_57], %55 {strides = array<i32>} : memref<1600x192xbf16, #tpu.memory_space<vmem>>, vector<64x192xbf16>,
    %c0_58 = arith.constant 0 : index
    %c0_59 = arith.constant 0 : index
    %c52 = arith.constant 52 : index
    %57 = vector.load %arg4[%c0_58, %c0_59, %c52] : memref<1x64x384xbf16, #tpu.memory_space<vmem>>, vector<1x64x192xbf16>
    %58 = vector.shape_cast %57 : vector<1x64x192xbf16> to vector<64x192xbf16>
    %c1216 = arith.constant 1216 : index
    %c0_60 = arith.constant 0 : index
    %59 = vector.load %arg6[%c1216, %c0_60] : memref<1600x192xbf16, #tpu.memory_space<vmem>>, vector<64x192xbf16>
    tpu.vector_store %arg6[%c1216, %c0_60], %58 {strides = array<i32>} : memref<1600x192xbf16, #tpu.memory_space<vmem>>, vector<64x192xbf16>,
    %c0_61 = arith.constant 0 : index
    %c0_62 = arith.constant 0 : index
    %c64_63 = arith.constant 64 : index
    %60 = vector.load %arg4[%c0_61, %c0_62, %c64_63] : memref<1x64x384xbf16, #tpu.memory_space<vmem>>, vector<1x64x192xbf16>
    %61 = vector.shape_cast %60 : vector<1x64x192xbf16> to vector<64x192xbf16>
    %c1280 = arith.constant 1280 : index
    %c0_64 = arith.constant 0 : index
    %62 = vector.load %arg6[%c1280, %c0_64] : memref<1600x192xbf16, #tpu.memory_space<vmem>>, vector<64x192xbf16>
    tpu.vector_store %arg6[%c1280, %c0_64], %61 {strides = array<i32>} : memref<1600x192xbf16, #tpu.memory_space<vmem>>, vector<64x192xbf16>,
    %c0_65 = arith.constant 0 : index
    %c0_66 = arith.constant 0 : index
    %c65 = arith.constant 65 : index
    %63 = vector.load %arg4[%c0_65, %c0_66, %c65] : memref<1x64x384xbf16, #tpu.memory_space<vmem>>, vector<1x64x192xbf16>
    %64 = vector.shape_cast %63 : vector<1x64x192xbf16> to vector<64x192xbf16>
    %c1344 = arith.constant 1344 : index
    %c0_67 = arith.constant 0 : index
    %65 = vector.load %arg6[%c1344, %c0_67] : memref<1600x192xbf16, #tpu.memory_space<vmem>>, vector<64x192xbf16>
    tpu.vector_store %arg6[%c1344, %c0_67], %64 {strides = array<i32>} : memref<1600x192xbf16, #tpu.memory_space<vmem>>, vector<64x192xbf16>,
    %c0_68 = arith.constant 0 : index
    %c0_69 = arith.constant 0 : index
    %c66 = arith.constant 66 : index
    %66 = vector.load %arg4[%c0_68, %c0_69, %c66] : memref<1x64x384xbf16, #tpu.memory_space<vmem>>, vector<1x64x192xbf16>
    %67 = vector.shape_cast %66 : vector<1x64x192xbf16> to vector<64x192xbf16>
    %c1408 = arith.constant 1408 : index
    %c0_70 = arith.constant 0 : index
    %68 = vector.load %arg6[%c1408, %c0_70] : memref<1600x192xbf16, #tpu.memory_space<vmem>>, vector<64x192xbf16>
    tpu.vector_store %arg6[%c1408, %c0_70], %67 {strides = array<i32>} : memref<1600x192xbf16, #tpu.memory_space<vmem>>, vector<64x192xbf16>,
    %c0_71 = arith.constant 0 : index
    %c0_72 = arith.constant 0 : index
    %c67 = arith.constant 67 : index
    %69 = vector.load %arg4[%c0_71, %c0_72, %c67] : memref<1x64x384xbf16, #tpu.memory_space<vmem>>, vector<1x64x192xbf16>
    %70 = vector.shape_cast %69 : vector<1x64x192xbf16> to vector<64x192xbf16>
    %c1472 = arith.constant 1472 : index
    %c0_73 = arith.constant 0 : index
    %71 = vector.load %arg6[%c1472, %c0_73] : memref<1600x192xbf16, #tpu.memory_space<vmem>>, vector<64x192xbf16>
    tpu.vector_store %arg6[%c1472, %c0_73], %70 {strides = array<i32>} : memref<1600x192xbf16, #tpu.memory_space<vmem>>, vector<64x192xbf16>,
    %c0_74 = arith.constant 0 : index
    %c0_75 = arith.constant 0 : index
    %c68 = arith.constant 68 : index
    %72 = vector.load %arg4[%c0_74, %c0_75, %c68] : memref<1x64x384xbf16, #tpu.memory_space<vmem>>, vector<1x64x192xbf16>
    %73 = vector.shape_cast %72 : vector<1x64x192xbf16> to vector<64x192xbf16>
    %c1536 = arith.constant 1536 : index
    %c0_76 = arith.constant 0 : index
    %74 = vector.load %arg6[%c1536, %c0_76] : memref<1600x192xbf16, #tpu.memory_space<vmem>>, vector<64x192xbf16>
    tpu.vector_store %arg6[%c1536, %c0_76], %73 {strides = array<i32>} : memref<1600x192xbf16, #tpu.memory_space<vmem>>, vector<64x192xbf16>,
    %c0_77 = arith.constant 0 : index
    %c0_78 = arith.constant 0 : index
    %75 = vector.load %arg2[%c0_77, %c0_78] : memref<64x1600xbf16, #tpu.memory_space<vmem>>, vector<64x1600xbf16>
    %c0_79 = arith.constant 0 : index
    %c0_80 = arith.constant 0 : index
    %76 = vector.load %arg6[%c0_79, %c0_80] : memref<1600x192xbf16, #tpu.memory_space<vmem>>, vector<1600x192xbf16>
    %cst = arith.constant dense<0.000000e+00> : vector<64x192xf32>
    %77 = tpu.matmul %75, %76, %cst {dimension_numbers = #tpu.dot_dimension_numbers<[1], [0], [0], [1], [0, 0, 1, 1], [], []>} : vector<64x1600xbf16>, vector<1600x192xbf16>, vector<64x192xf32> -> vector<64x192xf32>
    %c0_81 = arith.constant 0 : index
    %c0_82 = arith.constant 0 : index
    %78 = vector.load %arg3[%c0_81, %c0_82] : memref<64x1xf32, #tpu.memory_space<vmem>>, vector<64x1xf32>
    %79 = vector.broadcast %78 : vector<64x1xf32> to vector<64x192xf32>
    %80 = arith.addf %77, %79 : vector<64x192xf32>
    %c0_83 = arith.constant 0 : index
    %c0_84 = arith.constant 0 : index
    %c0_85 = arith.constant 0 : index
    %81 = vector.load %arg5[%c0_83, %c0_84, %c0_85] : memref<1x64x192xf32, #tpu.memory_space<vmem>>, vector<1x64x192xf32>
    %82 = vector.shape_cast %81 : vector<1x64x192xf32> to vector<64x192xf32>
    %83 = vector.shape_cast %80 : vector<64x192xf32> to vector<1x64x192xf32>
    tpu.vector_store %arg5[%c0_83, %c0_84, %c0_85], %83 {strides = array<i32>} : memref<1x64x192xf32, #tpu.memory_space<vmem>>, vector<1x64x192xf32>,
    return
  }
  func.func @transform_0(%arg0: i32, %arg1: i32) -> (i32, i32) {
    %c0_i32 = arith.constant 0 : i32
    %c0_i32_0 = arith.constant 0 : i32
    %c0_i32_1 = arith.constant 0 : i32
    return %c0_i32, %c0_i32_0 : i32, i32
  }
  func.func @transform_1(%arg0: i32, %arg1: i32) -> (i32, i32) {
    %c0_i32 = arith.constant 0 : i32
    %c0_i32_0 = arith.constant 0 : i32
    %c0_i32_1 = arith.constant 0 : i32
    return %c0_i32, %c0_i32_0 : i32, i32
  }
  func.func @transform_2(%arg0: i32, %arg1: i32) -> (i32, i32, i32) {
    %c0_i32 = arith.constant 0 : i32
    %c0_i32_0 = arith.constant 0 : i32
    %c0_i32_1 = arith.constant 0 : i32
    return %arg0, %c0_i32, %c0_i32_0 : i32, i32, i32
  }
  func.func @transform_3(%arg0: i32, %arg1: i32) -> (i32, i32, i32) {
    %c0_i32 = arith.constant 0 : i32
    %c0_i32_0 = arith.constant 0 : i32
    return %arg0, %c0_i32, %arg1 : i32, i32, i32
  }
}

</mosaic_0001>

<bundles_post_ra>
// kernel: conv2d_plus_const.1
= control target key start
LH: loop header
LB: loop body
LE: loop exit
PB: predicated region body
PF: predicated region fallthrough
CT: control target
= control target key end

     0   :  { %s4090_s12 = smov 0   ;;  %s4092_s13 = smov 0   ;;  %s5019_s0 = inlined_call_operand.vmem [shape: bf16[64,1600], index: 0, kind: input, shape index: {}]   ;;  %s5020_s1 = inlined_call_operand.vmem [shape: f32[64,1], index: 1, kind: input, shape index: {}]   ;;  %s5021_s2 = inlined_call_operand.vmem [shape: bf16[2,64,384], index: 2, kind: input, shape index: {}]   ;;  %s5022_s3 = inlined_call_operand.vmem [shape: f32[2,64,192], index: 3, kind: output, shape index: {}]  }
   0x1   :  { %s4094_s14 = smov 0  }
   0x2 LB: > { %s25_s15 = sadd.s32 1, %s4039_s13  ;;  %p3448_p0 = scmp.ge.s32.totalorder %s4043_s14, 1  ;;  %s4043_s14 = sphi %s4094_s14, %s13_s14   ;;  %s4039_s13 = sphi %s4092_s13, %s5024_s13   ;;  %s4035_s12 = sphi %s4090_s12, %s5023_s12  }
   0x3   : > { %p27_p1 = scmp.ge.s32.totalorder %s25_s15, 2  ;;  %p151_p2 = scmp.lt.s32.totalorder %s4043_s14, 3 }
   0x5   : > { %s5026_s15 = smov (%p27_p1, %s25_s15), 0  ;;  %p152_p3 = pnand %p3448_p0, %p151_p2 }
   0x6   : > { %p179_p4 = scmp.lt.s32.totalorder (!%p152_p3), %s4035_s12, 1  ;;  %vm244_vm0 = vcmask (!%p152_p3), 523264   ;;  %s4045_s20 = smov (!%p152_p3), 94   ;;  %v3925_v12 = vld [vmem:[%s5019_s0 + $0x4] ss:$52 sps:$4 sm:$0xff] (!%p152_p3)   ;;  %vm1155_vm1 = vcmask (!%p152_p3), 769024  }
   0x7   : > { %155 = sbr.rel (%p152_p3) target bundleno = 793 (0x319), region = 32  ;;  %s4046_s21 = smov (!%p152_p3), 127   ;;  %2868 = vmatprep.mubr.bf16.mxu1 (!%p152_p3), %v3925_v12  ;;  %v3928_v13 = vld [vmem:[%s5019_s0 + $0x1c] ss:$52 sps:$4 sm:$0xff] (!%p152_p3)   ;;  %vm308_vm2 = vcmask (!%p152_p3), 1039360   ;;  %vm1232_vm3 = vcmask (!%p152_p3), 760832  }
   0x8   : > { %s4047_s22 = smov (!%p152_p3), 93   ;;  %s4048_s23 = smov (!%p152_p3), 126   ;;  %3087 = vmatprep.mubr.bf16.mxu0 (!%p152_p3), %v3928_v13  ;;  %vm385_vm4 = vcmask (!%p152_p3), 1031168   ;;  %vm1309_vm5 = vcmask (!%p152_p3), 752640   ;;  %vm462_vm6 = vcmask (!%p152_p3), 1022976   ;;  %vm1386_vm7 = vcmask (!%p152_p3), 654336  }
   0x9   : > { %s4049_s24 = smov (!%p152_p3), 92   ;;  %s4050_s25 = smov (!%p152_p3), 125   ;;  %vm539_vm8 = vcmask (!%p152_p3), 1014784   ;;  %vm1463_vm9 = vcmask (!%p152_p3), 646144   ;;  %vm616_vm10 = vcmask (!%p152_p3), 916480   ;;  %vm1540_vm11 = vcmask (!%p152_p3), 637952  }
   0xa   : > { %s4051_s26 = smov (!%p152_p3), 80   ;;  %s4052_s4 = smov (!%p152_p3), 124   ;;  %vm693_vm12 = vcmask (!%p152_p3), 908288   ;;  %vm1617_vm13 = vcmask (!%p152_p3), 629760   ;;  %vm770_vm14 = vcmask (!%p152_p3), 900096   ;;  %vm1694_vm15 = vcmask (!%p152_p3), 621568  }
   0xb   : > { %s4053_s5 = smov (!%p152_p3), 79   ;;  %s4054_s6 = smov (!%p152_p3), 112  }
   0xc   : > { %s4055_s7 = smov (!%p152_p3), 78   ;;  %s4056_s8 = smov (!%p152_p3), 111  }
   0xd   : > { %s4057_s9 = smov (!%p152_p3), 77   ;;  %s4058_s10 = smov (!%p152_p3), 110  }
   0xe   : > { %s5028_s12 = smov (!%p179_p4, %s4035_s12), 1  ;;  %s4059_s11 = smov 76  }
   0xf   : > { %s3847_s16 = smul.u32 96, %s5028_s12  ;;  %s4062_s29 = smov 63  }
  0x10   : > { %s4063_s30 = smov 108  }
  0x11   : > { %s4114_s19 = scalar_lea.vmem %s5021_s2, %s3847_s16 }
  0x12   : > { %v4117_v0 = vld [vmem:[%s4114_s19 + $0x18] ss:$12 sps:$4 sm:$0xff]   ;;  %v4120_v1 = vld [vmem:[%s4114_s19 + $0x1c] ss:$12 sps:$4 sm:$0xff]   ;;  %v4124_v2 = vld [vmem:[%s4114_s19] ss:$12 sps:$4 sm:$0xff]  }
  0x13   : > { %1143 = vrot.lane.b32.xlu1 %v4117_v0, %s4045_s20  ;;  %v4127_v3 = vld [vmem:[%s4114_s19 + $0x4] ss:$12 sps:$4 sm:$0xff]   ;;  %v4130_v4 = vld [vmem:[%s4114_s19 + $0x34] ss:$12 sps:$4 sm:$0xff]   ;;  %247 = vst.msk [vmem:[#allocation2 + $0x18] sm:$0xff] %vm244_vm0, %v4120_v1  ;;  %1139 = vrot.lane.b32.xlu0 %v4124_v2, %s4045_s20 }
  0x14   : > { %v4133_v5 = vld [vmem:[%s4114_s19 + $0x30] ss:$12 sps:$4 sm:$0xff]   ;;  %v4139_v6 = vld [vmem:[%s4114_s19 + $0x4c] ss:$12 sps:$4 sm:$0xff]   ;;  %245 = vst.msk [vmem:[#allocation2 + $0x8] sm:$0xff] %vm244_vm0, %v4127_v3  ;;  %249 = vst.msk [vmem:[#allocation2 + $0x28] sm:$0xff] %vm244_vm0, %v4130_v4 }
  0x15   : > { %v4144_v7 = vld [vmem:[%s4114_s19 + $0x48] ss:$12 sps:$4 sm:$0xff]   ;;  %251 = vst.msk [vmem:[#allocation2 + $0x38] sm:$0xff] %vm244_vm0, %v4139_v6 }
  0x17   : > { %1145 = vrot.lane.b32.xlu1 %v4120_v1, %s4045_s20  ;;  %1141 = vrot.lane.b32.xlu0 %v4127_v3, %s4045_s20 }
  0x1a   : > { %v2319_v8 = vld [vmem:[#allocation2 + $0x18] sm:$0xff] }
  0x1b   : > { %1149 = vrot.lane.b32.xlu1 %v4130_v4, %s4045_s20  ;;  %v2317_v9 = vld [vmem:[#allocation2 + $0x8] sm:$0xff]  ;;  %1147 = vrot.lane.b32.xlu0 %v4133_v5, %s4045_s20 }
  0x1c   : > { %2836 = vmatprep.subr.bf16.mxu1 %v2317_v9  ;;  %v2321_v10 = vld [vmem:[#allocation2 + $0x28] sm:$0xff]  ;;  %v2323_v11 = vld [vmem:[#allocation2 + $0x38] sm:$0xff] }
  0x1d   : > { %2837 = vmatpush1.bf16.msra.mxu1 %v4124_v2 }
  0x1e   : > { %2838 = vmatprep.subr.bf16.mxu1 %v2319_v8 }
  0x1f   : > { %1153 = vrot.lane.b32.xlu1 %v4139_v6, %s4045_s20  ;;  %1151 = vrot.lane.b32.xlu0 %v4144_v7, %s4045_s20 }
  0x21   : > { %2839 = vmatpush1.bf16.msra.mxu1 %v4117_v0 }
  0x22   : > { %2840 = vmatprep.subr.bf16.mxu1 %v2321_v10 }
  0x23   : > { %294 = vrot.lane.b32.xlu1 %v4127_v3, %s4046_s21  ;;  %292 = vrot.lane.b32.xlu0 %v4124_v2, %s4046_s21 }
  0x25   : > { %2841 = vmatpush1.bf16.msra.mxu1 %v4133_v5 }
  0x26   : > { %2842 = vmatprep.subr.bf16.mxu1 %v2323_v11 }
  0x27   : > { %1218 = vrot.lane.b32.xlu1 %v4127_v3, %s4047_s22  ;;  %1216 = vrot.lane.b32.xlu0 %v4124_v2, %s4047_s22 }
  0x29   : > { %2843 = vmatpush1.bf16.msra.mxu1 %v4144_v7 }
  0x2b   : > { %298 = vrot.lane.b32.xlu1 %v4120_v1, %s4046_s21  ;;  %296 = vrot.lane.b32.xlu0 %v4117_v0, %s4046_s21 }
  0x2f   : > { %1222 = vrot.lane.b32.xlu1 %v4120_v1, %s4047_s22  ;;  %1220 = vrot.lane.b32.xlu0 %v4117_v0, %s4047_s22 }
  0x33   : > { %302 = vrot.lane.b32.xlu1 %v4130_v4, %s4046_s21  ;;  %300 = vrot.lane.b32.xlu0 %v4133_v5, %s4046_s21 }
  0x37   : > { %1226 = vrot.lane.b32.xlu1 %v4130_v4, %s4047_s22  ;;  %1224 = vrot.lane.b32.xlu0 %v4133_v5, %s4047_s22 }
  0x3b   : > { %306 = vrot.lane.b32.xlu1 %v4139_v6, %s4046_s21  ;;  %304 = vrot.lane.b32.xlu0 %v4144_v7, %s4046_s21 }
  0x3f   : > { %1230 = vrot.lane.b32.xlu1 %v4139_v6, %s4047_s22  ;;  %1228 = vrot.lane.b32.xlu0 %v4144_v7, %s4047_s22 }
  0x43   : > { %371 = vrot.lane.b32.xlu1 %v4127_v3, %s4048_s23  ;;  %369 = vrot.lane.b32.xlu0 %v4124_v2, %s4048_s23 }
  0x47   : > { %1295 = vrot.lane.b32.xlu1 %v4127_v3, %s4049_s24  ;;  %1293 = vrot.lane.b32.xlu0 %v4124_v2, %s4049_s24 }
  0x4b   : > { %375 = vrot.lane.b32.xlu1 %v4120_v1, %s4048_s23  ;;  %373 = vrot.lane.b32.xlu0 %v4117_v0, %s4048_s23 }
  0x4f   : > { %1299 = vrot.lane.b32.xlu1 %v4120_v1, %s4049_s24  ;;  %1297 = vrot.lane.b32.xlu0 %v4117_v0, %s4049_s24 }
  0x53   : > { %379 = vrot.lane.b32.xlu1 %v4130_v4, %s4048_s23  ;;  %377 = vrot.lane.b32.xlu0 %v4133_v5, %s4048_s23 }
  0x57   : > { %1303 = vrot.lane.b32.xlu1 %v4130_v4, %s4049_s24  ;;  %1301 = vrot.lane.b32.xlu0 %v4133_v5, %s4049_s24 }
  0x5b   : > { %383 = vrot.lane.b32.xlu1 %v4139_v6, %s4048_s23  ;;  %381 = vrot.lane.b32.xlu0 %v4144_v7, %s4048_s23 }
  0x5f   : > { %1307 = vrot.lane.b32.xlu1 %v4139_v6, %s4049_s24  ;;  %1305 = vrot.lane.b32.xlu0 %v4144_v7, %s4049_s24 }
  0x63   : > { %448 = vrot.lane.b32.xlu1 %v4127_v3, %s4050_s25  ;;  %446 = vrot.lane.b32.xlu0 %v4124_v2, %s4050_s25 }
  0x67   : > { %1372 = vrot.lane.b32.xlu1 %v4127_v3, %s4051_s26  ;;  %1370 = vrot.lane.b32.xlu0 %v4124_v2, %s4051_s26 }
  0x6b   : > { %452 = vrot.lane.b32.xlu1 %v4120_v1, %s4050_s25  ;;  %450 = vrot.lane.b32.xlu0 %v4117_v0, %s4050_s25 }
  0x6f   : > { %1376 = vrot.lane.b32.xlu1 %v4120_v1, %s4051_s26  ;;  %1374 = vrot.lane.b32.xlu0 %v4117_v0, %s4051_s26 }
  0x73   : > { %456 = vrot.lane.b32.xlu1 %v4130_v4, %s4050_s25  ;;  %454 = vrot.lane.b32.xlu0 %v4133_v5, %s4050_s25 }
  0x77   : > { %1380 = vrot.lane.b32.xlu1 %v4130_v4, %s4051_s26  ;;  %1378 = vrot.lane.b32.xlu0 %v4133_v5, %s4051_s26 }
  0x7b   : > { %460 = vrot.lane.b32.xlu1 %v4139_v6, %s4050_s25  ;;  %458 = vrot.lane.b32.xlu0 %v4144_v7, %s4050_s25 }
  0x7f   : > { %1384 = vrot.lane.b32.xlu1 %v4139_v6, %s4051_s26  ;;  %1382 = vrot.lane.b32.xlu0 %v4144_v7, %s4051_s26 }
  0x83   : > { %525 = vrot.lane.b32.xlu1 %v4127_v3, %s4052_s4  ;;  %523 = vrot.lane.b32.xlu0 %v4124_v2, %s4052_s4 }
  0x85   : > { %v1144_v14 = vpop.permute.xlu1 %1143  ;;  %v1140_v15 = vpop.permute.xlu0 %1139 }
  0x87   : > { %1449 = vrot.lane.b32.xlu1 %v4127_v3, %s4053_s5  ;;  %1447 = vrot.lane.b32.xlu0 %v4124_v2, %s4053_s5 }
  0x89   : > { %v1146_v16 = vpop.permute.xlu1 %1145  ;;  %v1142_v18 = vpop.permute.xlu0 %1141 }
  0x8a   : > { %v1157_v17 = vsel %vm1155_vm1, %v1144_v14, %v1146_v16  ;;  %1171 = vst.msk [vmem:[#allocation2 + $0x318] sm:$0xff] %vm244_vm0, %v1146_v16  ;;  %v1156_v19 = vsel %vm1155_vm1, %v1140_v15, %v1142_v18  ;;  %1169 = vst.msk [vmem:[#allocation2 + $0x308] sm:$0xff] %vm244_vm0, %v1142_v18 }
  0x8b   : > { %529 = vrot.lane.b32.xlu1 %v4120_v1, %s4052_s4  ;;  %527 = vrot.lane.b32.xlu0 %v4117_v0, %s4052_s4 }
  0x8d   : > { %v1150_v20 = vpop.permute.xlu1 %1149  ;;  %v1148_v21 = vpop.permute.xlu0 %1147 }
  0x8e   : > { %1173 = vst.msk [vmem:[#allocation2 + $0x328] sm:$0xff] %vm244_vm0, %v1150_v20  ;;  %v1158_v22 = vsel %vm1155_vm1, %v1148_v21, %v1150_v20 }
  0x8f   : > { %1453 = vrot.lane.b32.xlu1 %v4120_v1, %s4053_s5  ;;  %1451 = vrot.lane.b32.xlu0 %v4117_v0, %s4053_s5 }
  0x91   : > { %v1154_v23 = vpop.permute.xlu1 %1153  ;;  %v1152_v24 = vpop.permute.xlu0 %1151  ;;  %v2413_v25 = vld [vmem:[#allocation2 + $0x308] sm:$0xff]  ;;  %v2415_v26 = vld [vmem:[#allocation2 + $0x318] sm:$0xff] }
  0x92   : > { %1175 = vst.msk [vmem:[#allocation2 + $0x338] sm:$0xff] %vm244_vm0, %v1154_v23  ;;  %v1159_v27 = vsel %vm1155_vm1, %v1152_v24, %v1154_v23  ;;  %3055 = vmatprep.subr.bf16.mxu0 %v2413_v25  ;;  %vm847_vm1 = vcmask 891904  }
  0x93   : > { %533 = vrot.lane.b32.xlu1 %v4130_v4, %s4052_s4  ;;  %3056 = vmatpush1.bf16.msra.mxu0 %v1156_v19 }
  0x94   : > { %531 = vrot.lane.b32.xlu0 %v4133_v5, %s4052_s4  ;;  %3057 = vmatprep.subr.bf16.mxu0 %v2415_v26 }
  0x95   : > { %v295_v28 = vpop.permute.xlu1 %294  ;;  %v293_v29 = vpop.permute.xlu0 %292  ;;  %v2417_v30 = vld [vmem:[#allocation2 + $0x328] sm:$0xff] }
  0x96   : > { %322 = vst.msk [vmem:[#allocation2 + $0x48] sm:$0xff] %vm244_vm0, %v295_v28  ;;  %v309_v31 = vsel %vm308_vm2, %v293_v29, %v295_v28 }
  0x97   : > { %1457 = vrot.lane.b32.xlu1 %v4130_v4, %s4053_s5  ;;  %3058 = vmatpush1.bf16.msra.mxu0 %v1157_v17 }
  0x98   : > { %1455 = vrot.lane.b32.xlu0 %v4133_v5, %s4053_s5  ;;  %3059 = vmatprep.subr.bf16.mxu0 %v2417_v30 }
  0x99   : > { %v1219_v32 = vpop.permute.xlu1 %1218  ;;  %v1217_v33 = vpop.permute.xlu0 %1216  ;;  %v2419_v34 = vld [vmem:[#allocation2 + $0x338] sm:$0xff] }
  0x9a   : > { %1246 = vst.msk [vmem:[#allocation2 + $0x348] sm:$0xff] %vm244_vm0, %v1219_v32  ;;  %v1233_v35 = vsel %vm1232_vm3, %v1217_v33, %v1219_v32  ;;  %v4342_v33 = vld [vmem:[%s4114_s19 + $0x30] ss:$12 sps:$4 sm:$0xff]  }
  0x9b   : > { %537 = vrot.lane.b32.xlu1 %v4139_v6, %s4052_s4  ;;  %3060 = vmatpush1.bf16.msra.mxu0 %v1158_v22 }
  0x9c   : > { %535 = vrot.lane.b32.xlu0 %v4144_v7, %s4052_s4  ;;  %3061 = vmatprep.subr.bf16.mxu0 %v2419_v34  ;;  %s4060_s4 = smov 109  }
  0x9d   : > { %v299_v36 = vpop.permute.xlu1 %298  ;;  %v2325_v37 = vld [vmem:[#allocation2 + $0x48] sm:$0xff]  ;;  %v297_v38 = vpop.permute.xlu0 %296 }
  0x9e   : > { %324 = vst.msk [vmem:[#allocation2 + $0x58] sm:$0xff] %vm244_vm0, %v299_v36  ;;  %2844 = vmatprep.subr.bf16.mxu1 %v2325_v37  ;;  %v310_v39 = vsel %vm308_vm2, %v297_v38, %v299_v36  ;;  %v4354_v37 = vld [vmem:[%s4114_s19 + $0x48] ss:$12 sps:$4 sm:$0xff]  }
  0x9f   : > { %1461 = vrot.lane.b32.xlu1 %v4139_v6, %s4053_s5  ;;  %2845 = vmatpush1.bf16.msra.mxu1 %v309_v31  ;;  %v4336_v31 = vld [vmem:[%s4114_s19 + $0x34] ss:$12 sps:$4 sm:$0xff]  }
  0xa0   : > { %3062 = vmatpush1.bf16.msra.mxu0 %v1159_v27  ;;  %1459 = vrot.lane.b32.xlu0 %v4144_v7, %s4053_s5  ;;  %s4065_s5 = smov 96  }
  0xa1   : > { %v1223_v40 = vpop.permute.xlu1 %1222  ;;  %v2421_v41 = vld [vmem:[#allocation2 + $0x348] sm:$0xff]  ;;  %v1221_v42 = vpop.permute.xlu0 %1220 }
  0xa2   : > { %1248 = vst.msk [vmem:[#allocation2 + $0x358] sm:$0xff] %vm244_vm0, %v1223_v40  ;;  %3063 = vmatprep.subr.bf16.mxu0 %v2421_v41  ;;  %v1234_v43 = vsel %vm1232_vm3, %v1221_v42, %v1223_v40 }
  0xa3   : > { %602 = vrot.lane.b32.xlu1 %v4127_v3, %s4054_s6 }
  0xa4   : > { %600 = vrot.lane.b32.xlu0 %v4124_v2, %s4054_s6  ;;  %3064 = vmatpush1.bf16.msra.mxu0 %v1233_v35 }
  0xa5   : > { %v303_v44 = vpop.permute.xlu1 %302  ;;  %v2327_v45 = vld [vmem:[#allocation2 + $0x58] sm:$0xff]  ;;  %v301_v46 = vpop.permute.xlu0 %300 }
  0xa6   : > { %326 = vst.msk [vmem:[#allocation2 + $0x68] sm:$0xff] %vm244_vm0, %v303_v44  ;;  %2846 = vmatprep.subr.bf16.mxu1 %v2327_v45  ;;  %v311_v47 = vsel %vm308_vm2, %v301_v46, %v303_v44 }
  0xa7   : > { %1526 = vrot.lane.b32.xlu1 %v4127_v3, %s4055_s7  ;;  %2847 = vmatpush1.bf16.msra.mxu1 %v310_v39 }
  0xa8   : > { %1524 = vrot.lane.b32.xlu0 %v4124_v2, %s4055_s7 }
  0xa9   : > { %v1227_v48 = vpop.permute.xlu1 %1226  ;;  %v2423_v49 = vld [vmem:[#allocation2 + $0x358] sm:$0xff]  ;;  %v1225_v50 = vpop.permute.xlu0 %1224 }
  0xaa   : > { %1250 = vst.msk [vmem:[#allocation2 + $0x368] sm:$0xff] %vm244_vm0, %v1227_v48  ;;  %3065 = vmatprep.subr.bf16.mxu0 %v2423_v49  ;;  %v1235_v51 = vsel %vm1232_vm3, %v1225_v50, %v1227_v48 }
  0xab   : > { %606 = vrot.lane.b32.xlu1 %v4120_v1, %s4054_s6  ;;  %3066 = vmatpush1.bf16.msra.mxu0 %v1234_v43  ;;  %v4366_v43 = vld [vmem:[%s4114_s19 + $0x4] ss:$12 sps:$4 sm:$0xff]  }
  0xac   : > { %604 = vrot.lane.b32.xlu0 %v4117_v0, %s4054_s6 }
  0xad   : > { %v307_v52 = vpop.permute.xlu1 %306  ;;  %v2329_v53 = vld [vmem:[#allocation2 + $0x68] sm:$0xff]  ;;  %v305_v54 = vpop.permute.xlu0 %304 }
  0xae   : > { %328 = vst.msk [vmem:[#allocation2 + $0x78] sm:$0xff] %vm244_vm0, %v307_v52  ;;  %2848 = vmatprep.subr.bf16.mxu1 %v2329_v53  ;;  %v312_v55 = vsel %vm308_vm2, %v305_v54, %v307_v52  ;;  %v4384_v53 = vld [vmem:[%s4114_s19 + $0x1c] ss:$12 sps:$4 sm:$0xff]   ;;  %vm1884_vm2 = vcmask 515072  }
  0xaf   : > { %1530 = vrot.lane.b32.xlu1 %v4120_v1, %s4055_s7  ;;  %2849 = vmatpush1.bf16.msra.mxu1 %v311_v47  ;;  %v4372_v47 = vld [vmem:[%s4114_s19] ss:$12 sps:$4 sm:$0xff]  }
  0xb0   : > { %1528 = vrot.lane.b32.xlu0 %v4117_v0, %s4055_s7 }
  0xb1   : > { %v1231_v56 = vpop.permute.xlu1 %1230  ;;  %v2425_v57 = vld [vmem:[#allocation2 + $0x368] sm:$0xff]  ;;  %v1229_v58 = vpop.permute.xlu0 %1228 }
  0xb2   : > { %1252 = vst.msk [vmem:[#allocation2 + $0x378] sm:$0xff] %vm244_vm0, %v1231_v56  ;;  %3067 = vmatprep.subr.bf16.mxu0 %v2425_v57  ;;  %v1236_v59 = vsel %vm1232_vm3, %v1229_v58, %v1231_v56  ;;  %v4390_v57 = vld [vmem:[%s4114_s19 + $0x18] ss:$12 sps:$4 sm:$0xff]   ;;  %vm924_vm3 = vcmask 883712  }
  0xb3   : > { %610 = vrot.lane.b32.xlu1 %v4130_v4, %s4054_s6  ;;  %3068 = vmatpush1.bf16.msra.mxu0 %v1235_v51 }
  0xb4   : > { %608 = vrot.lane.b32.xlu0 %v4133_v5, %s4054_s6 }
  0xb5   : > { %v372_v60 = vpop.permute.xlu1 %371  ;;  %v2331_v61 = vld [vmem:[#allocation2 + $0x78] sm:$0xff]  ;;  %v370_v62 = vpop.permute.xlu0 %369 }
  0xb6   : > { %399 = vst.msk [vmem:[#allocation2 + $0x88] sm:$0xff] %vm244_vm0, %v372_v60  ;;  %2850 = vmatprep.subr.bf16.mxu1 %v2331_v61  ;;  %v386_v63 = vsel %vm385_vm4, %v370_v62, %v372_v60 }
  0xb7   : > { %1534 = vrot.lane.b32.xlu1 %v4130_v4, %s4055_s7  ;;  %2851 = vmatpush1.bf16.msra.mxu1 %v312_v55 }
  0xb8   : > { %1532 = vrot.lane.b32.xlu0 %v4133_v5, %s4055_s7 }
  0xb9   : > { %v1296_v8 = vpop.permute.xlu1 %1295  ;;  %v2427_v9 = vld [vmem:[#allocation2 + $0x378] sm:$0xff]  ;;  %v1294_v10 = vpop.permute.xlu0 %1293 }
  0xba   : > { %1323 = vst.msk [vmem:[#allocation2 + $0x388] sm:$0xff] %vm244_vm0, %v1296_v8  ;;  %3069 = vmatprep.subr.bf16.mxu0 %v2427_v9  ;;  %v1310_v11 = vsel %vm1309_vm5, %v1294_v10, %v1296_v8 }
  0xbb   : > { %614 = vrot.lane.b32.xlu1 %v4139_v6, %s4054_s6  ;;  %3070 = vmatpush1.bf16.msra.mxu0 %v1236_v59 }
  0xbc   : > { %612 = vrot.lane.b32.xlu0 %v4144_v7, %s4054_s6  ;;  %s4066_s6 = smov 61  }
  0xbd   : > { %v376_v12 = vpop.permute.xlu1 %375  ;;  %v2333_v13 = vld [vmem:[#allocation2 + $0x88] sm:$0xff]  ;;  %v374_v14 = vpop.permute.xlu0 %373 }
  0xbe   : > { %401 = vst.msk [vmem:[#allocation2 + $0x98] sm:$0xff] %vm244_vm0, %v376_v12  ;;  %2852 = vmatprep.subr.bf16.mxu1 %v2333_v13  ;;  %v387_v15 = vsel %vm385_vm4, %v374_v14, %v376_v12  ;;  %v3923_v14 = vld [vmem:[%s5019_s0] ss:$52 sps:$4 sm:$0xff]  }
  0xbf   : > { %1538 = vrot.lane.b32.xlu1 %v4139_v6, %s4055_s7  ;;  %2853 = vmatpush1.bf16.msra.mxu1 %v386_v63 }
  0xc0   : > { %1536 = vrot.lane.b32.xlu0 %v4144_v7, %s4055_s7  ;;  %s3726_s7 = sshll.u32 %s5028_s12, 7 }
  0xc1   : > { %v1300_v16 = vpop.permute.xlu1 %1299  ;;  %v2429_v17 = vld [vmem:[#allocation2 + $0x388] sm:$0xff]  ;;  %v1298_v18 = vpop.permute.xlu0 %1297 }
  0xc2   : > { %1325 = vst.msk [vmem:[#allocation2 + $0x398] sm:$0xff] %vm244_vm0, %v1300_v16  ;;  %3071 = vmatprep.subr.bf16.mxu0 %v2429_v17  ;;  %v1311_v19 = vsel %vm1309_vm5, %v1298_v18, %v1300_v16  ;;  %v3938_v17 = vld [vmem:[%s5019_s0 + $0x6c] ss:$52 sps:$4 sm:$0xff]  }
  0xc3   : > { %679 = vrot.lane.b32.xlu1 %v4127_v3, %s4056_s8  ;;  %3072 = vmatpush1.bf16.msra.mxu0 %v1310_v11 }
  0xc4   : > { %677 = vrot.lane.b32.xlu0 %v4124_v2, %s4056_s8 }
  0xc5   : > { %v380_v6 = vpop.permute.xlu1 %379  ;;  %v2335_v20 = vld [vmem:[#allocation2 + $0x98] sm:$0xff]  ;;  %v378_v7 = vpop.permute.xlu0 %377 }
  0xc6   : > { %403 = vst.msk [vmem:[#allocation2 + $0xa8] sm:$0xff] %vm244_vm0, %v380_v6  ;;  %2854 = vmatprep.subr.bf16.mxu1 %v2335_v20  ;;  %v388_v21 = vsel %vm385_vm4, %v378_v7, %v380_v6  ;;  %v3926_v6 = vld [vmem:[%s5019_s0 + $0x18] ss:$52 sps:$4 sm:$0xff]  }
  0xc7   : > { %1603 = vrot.lane.b32.xlu1 %v4127_v3, %s4057_s9  ;;  %2855 = vmatpush1.bf16.msra.mxu1 %v387_v15 }
  0xc8   : > { %1601 = vrot.lane.b32.xlu0 %v4124_v2, %s4057_s9 }
  0xc9   : > { %v1304_v22 = vpop.permute.xlu1 %1303  ;;  %v2431_v23 = vld [vmem:[#allocation2 + $0x398] sm:$0xff]  ;;  %v1302_v24 = vpop.permute.xlu0 %1301 }
  0xca   : > { %1327 = vst.msk [vmem:[#allocation2 + $0x3a8] sm:$0xff] %vm244_vm0, %v1304_v22  ;;  %3073 = vmatprep.subr.bf16.mxu0 %v2431_v23  ;;  %v1312_v25 = vsel %vm1309_vm5, %v1302_v24, %v1304_v22  ;;  %v3942_v24 = vld [vmem:[%s5019_s0 + $0x68] ss:$52 sps:$4 sm:$0xff]  }
  0xcb   : > { %683 = vrot.lane.b32.xlu1 %v4120_v1, %s4056_s8  ;;  %3074 = vmatpush1.bf16.msra.mxu0 %v1311_v19 }
  0xcc   : > { %681 = vrot.lane.b32.xlu0 %v4117_v0, %s4056_s8 }
  0xcd   : > { %v384_v3 = vpop.permute.xlu1 %383  ;;  %v2337_v26 = vld [vmem:[#allocation2 + $0xa8] sm:$0xff]  ;;  %v382_v2 = vpop.permute.xlu0 %381 }
  0xce   : > { %405 = vst.msk [vmem:[#allocation2 + $0xb8] sm:$0xff] %vm244_vm0, %v384_v3  ;;  %2856 = vmatprep.subr.bf16.mxu1 %v2337_v26  ;;  %v389_v27 = vsel %vm385_vm4, %v382_v2, %v384_v3  ;;  %v3947_v26 = vld [vmem:[%s5019_s0 + $0xd4] ss:$52 sps:$4 sm:$0xff]   ;;  %vm2001_vm4 = vcmask 506880  }
  0xcf   : > { %1607 = vrot.lane.b32.xlu1 %v4120_v1, %s4057_s9  ;;  %2857 = vmatpush1.bf16.msra.mxu1 %v388_v21  ;;  %v3943_v21 = vld [vmem:[%s5019_s0 + $0x84] ss:$52 sps:$4 sm:$0xff]  }
  0xd0   : > { %1605 = vrot.lane.b32.xlu0 %v4117_v0, %s4057_s9 }
  0xd1   : > { %v1308_v28 = vpop.permute.xlu1 %1307  ;;  %v2433_v29 = vld [vmem:[#allocation2 + $0x3a8] sm:$0xff]  ;;  %v1306_v30 = vpop.permute.xlu0 %1305 }
  0xd2   : > { %1329 = vst.msk [vmem:[#allocation2 + $0x3b8] sm:$0xff] %vm244_vm0, %v1308_v28  ;;  %3075 = vmatprep.subr.bf16.mxu0 %v2433_v29  ;;  %v1313_v1 = vsel %vm1309_vm5, %v1306_v30, %v1308_v28  ;;  %v3945_v28 = vld [vmem:[%s5019_s0 + $0x80] ss:$52 sps:$4 sm:$0xff]   ;;  %vm1001_vm5 = vcmask 785408  }
  0xd3   : > { %687 = vrot.lane.b32.xlu1 %v4130_v4, %s4056_s8  ;;  %3076 = vmatpush1.bf16.msra.mxu0 %v1312_v25  ;;  %v4348_v4 = vld [vmem:[%s4114_s19 + $0x4c] ss:$12 sps:$4 sm:$0xff]  }
  0xd4   : > { %685 = vrot.lane.b32.xlu0 %v4133_v5, %s4056_s8 }
  0xd5   : > { %v449_v0 = vpop.permute.xlu1 %448  ;;  %v2339_v32 = vld [vmem:[#allocation2 + $0xb8] sm:$0xff]  ;;  %v447_v34 = vpop.permute.xlu0 %446 }
  0xd6   : > { %476 = vst.msk [vmem:[#allocation2 + $0xc8] sm:$0xff] %vm244_vm0, %v449_v0  ;;  %2858 = vmatprep.subr.bf16.mxu1 %v2339_v32  ;;  %v463_v35 = vsel %vm462_vm6, %v447_v34, %v449_v0  ;;  %v3949_v34 = vld [vmem:[%s5019_s0 + $0xd0] ss:$52 sps:$4 sm:$0xff]  }
  0xd7   : > { %1611 = vrot.lane.b32.xlu1 %v4336_v31, %s4057_s9  ;;  %2859 = vmatpush1.bf16.msra.mxu1 %v389_v27 }
  0xd8   : > { %1609 = vrot.lane.b32.xlu0 %v4342_v33, %s4057_s9 }
  0xd9   : > { %v1373_v5 = vpop.permute.xlu1 %1372  ;;  %v2435_v36 = vld [vmem:[#allocation2 + $0x3b8] sm:$0xff]  ;;  %v1371_v38 = vpop.permute.xlu0 %1370 }
  0xda   : > { %1400 = vst.msk [vmem:[#allocation2 + $0x3c8] sm:$0xff] %vm244_vm0, %v1373_v5  ;;  %3077 = vmatprep.subr.bf16.mxu0 %v2435_v36  ;;  %v1387_v39 = vsel %vm1386_vm7, %v1371_v38, %v1373_v5  ;;  %v3956_v36 = vld [vmem:[%s5019_s0 + $0x13c] ss:$52 sps:$4 sm:$0xff]  }
  0xdb   : > { %691 = vrot.lane.b32.xlu1 %v4348_v4, %s4056_s8  ;;  %3078 = vmatpush1.bf16.msra.mxu0 %v1313_v1  ;;  %v3950_v1 = vld [vmem:[%s5019_s0 + $0xec] ss:$52 sps:$4 sm:$0xff]  }
  0xdc   : > { %689 = vrot.lane.b32.xlu0 %v4354_v37, %s4056_s8 }
  0xdd   : > { %v453_v40 = vpop.permute.xlu1 %452  ;;  %v2341_v41 = vld [vmem:[#allocation2 + $0xc8] sm:$0xff]  ;;  %v451_v42 = vpop.permute.xlu0 %450 }
  0xde   : > { %478 = vst.msk [vmem:[#allocation2 + $0xd8] sm:$0xff] %vm244_vm0, %v453_v40  ;;  %2860 = vmatprep.subr.bf16.mxu1 %v2341_v41  ;;  %v464_v44 = vsel %vm462_vm6, %v451_v42, %v453_v40  ;;  %v3953_v40 = vld [vmem:[%s5019_s0 + $0xe8] ss:$52 sps:$4 sm:$0xff]  }
  0xdf   : > { %1615 = vrot.lane.b32.xlu1 %v4348_v4, %s4057_s9  ;;  %2861 = vmatpush1.bf16.msra.mxu1 %v463_v35 }
  0xe0   : > { %1613 = vrot.lane.b32.xlu0 %v4354_v37, %s4057_s9  ;;  %s4061_s9 = smov 64  }
  0xe1   : > { %v1377_v45 = vpop.permute.xlu1 %1376  ;;  %v2437_v46 = vld [vmem:[#allocation2 + $0x3c8] sm:$0xff]  ;;  %v1375_v48 = vpop.permute.xlu0 %1374 }
  0xe2   : > { %1402 = vst.msk [vmem:[#allocation2 + $0x3d8] sm:$0xff] %vm244_vm0, %v1377_v45  ;;  %3079 = vmatprep.subr.bf16.mxu0 %v2437_v46  ;;  %v1388_v49 = vsel %vm1386_vm7, %v1375_v48, %v1377_v45  ;;  %v3958_v48 = vld [vmem:[%s5019_s0 + $0x138] ss:$52 sps:$4 sm:$0xff]  }
  0xe3   : > { %756 = vrot.lane.b32.xlu1 %v4366_v43, %s4058_s10  ;;  %3080 = vmatpush1.bf16.msra.mxu0 %v1387_v39 }
  0xe4   : > { %754 = vrot.lane.b32.xlu0 %v4372_v47, %s4058_s10 }
  0xe5   : > { %v457_v50 = vpop.permute.xlu1 %456  ;;  %v2343_v51 = vld [vmem:[#allocation2 + $0xd8] sm:$0xff]  ;;  %v455_v52 = vpop.permute.xlu0 %454 }
  0xe6   : > { %480 = vst.msk [vmem:[#allocation2 + $0xe8] sm:$0xff] %vm244_vm0, %v457_v50  ;;  %2862 = vmatprep.subr.bf16.mxu1 %v2343_v51  ;;  %v465_v54 = vsel %vm462_vm6, %v455_v52, %v457_v50  ;;  %v3966_v51 = vld [vmem:[%s5019_s0 + $0xc] ss:$52 sps:$4 sm:$0xff]  }
  0xe7   : > { %1680 = vrot.lane.b32.xlu1 %v4366_v43, %s4059_s11  ;;  %2863 = vmatpush1.bf16.msra.mxu1 %v464_v44  ;;  %v3959_v44 = vld [vmem:[%s5019_s0 + $0x154] ss:$52 sps:$4 sm:$0xff]  }
  0xe8   : > { %1678 = vrot.lane.b32.xlu0 %v4372_v47, %s4059_s11 }
  0xe9   : > { %v1381_v55 = vpop.permute.xlu1 %1380  ;;  %v2439_v56 = vld [vmem:[#allocation2 + $0x3d8] sm:$0xff]  ;;  %v1379_v58 = vpop.permute.xlu0 %1378 }
  0xea   : > { %1404 = vst.msk [vmem:[#allocation2 + $0x3e8] sm:$0xff] %vm244_vm0, %v1381_v55  ;;  %3081 = vmatprep.subr.bf16.mxu0 %v2439_v56  ;;  %v1389_v59 = vsel %vm1386_vm7, %v1379_v58, %v1381_v55  ;;  %v3963_v55 = vld [vmem:[%s5019_s0 + $0x150] ss:$52 sps:$4 sm:$0xff]  }
  0xeb   : > { %760 = vrot.lane.b32.xlu1 %v4384_v53, %s4058_s10  ;;  %3082 = vmatpush1.bf16.msra.mxu0 %v1388_v49 }
  0xec   : > { %758 = vrot.lane.b32.xlu0 %v4390_v57, %s4058_s10 }
  0xed   : > { %v461_v60 = vpop.permute.xlu1 %460  ;;  %v2345_v61 = vld [vmem:[#allocation2 + $0xe8] sm:$0xff]  ;;  %v459_v62 = vpop.permute.xlu0 %458 }
  0xee   : > { %482 = vst.msk [vmem:[#allocation2 + $0xf8] sm:$0xff] %vm244_vm0, %v461_v60  ;;  %2864 = vmatprep.subr.bf16.mxu1 %v2345_v61  ;;  %v466_v63 = vsel %vm462_vm6, %v459_v62, %v461_v60  ;;  %vm2118_vm6 = vcmask 498688  }
  0xef   : > { %1684 = vrot.lane.b32.xlu1 %v4384_v53, %s4059_s11  ;;  %2865 = vmatpush1.bf16.msra.mxu1 %v465_v54 }
  0xf0   : > { %1682 = vrot.lane.b32.xlu0 %v4390_v57, %s4059_s11 }
  0xf1   : > { %v1385_v8 = vpop.permute.xlu1 %1384  ;;  %v2441_v9 = vld [vmem:[#allocation2 + $0x3e8] sm:$0xff]  ;;  %v1383_v10 = vpop.permute.xlu0 %1382 }
  0xf2   : > { %1406 = vst.msk [vmem:[#allocation2 + $0x3f8] sm:$0xff] %vm244_vm0, %v1385_v8  ;;  %3083 = vmatprep.subr.bf16.mxu0 %v2441_v9  ;;  %v1390_v11 = vsel %vm1386_vm7, %v1383_v10, %v1385_v8  ;;  %vm1078_vm7 = vcmask 777216  }
  0xf3   : > { %764 = vrot.lane.b32.xlu1 %v4336_v31, %s4058_s10  ;;  %3084 = vmatpush1.bf16.msra.mxu0 %v1389_v59  ;;  %v3970_v59 = vld [vmem:[%s5019_s0 + $0x24] ss:$52 sps:$4 sm:$0xff]  }
  0xf4   : > { %762 = vrot.lane.b32.xlu0 %v4342_v33, %s4058_s10 }
  0xf5   : > { %v526_v12 = vpop.permute.xlu1 %525  ;;  %v2347_v13 = vld [vmem:[#allocation2 + $0xf8] sm:$0xff]  ;;  %v524_v15 = vpop.permute.xlu0 %523 }
  0xf6   : > { %553 = vst.msk [vmem:[#allocation2 + $0x108] sm:$0xff] %vm244_vm0, %v526_v12  ;;  %2866 = vmatprep.subr.bf16.mxu1 %v2347_v13  ;;  %v540_v16 = vsel %vm539_vm8, %v524_v15, %v526_v12  ;;  %v3929_v15 = vld [vmem:[%s4114_s19 + $0x8] ss:$12 sps:$4 sm:$0xff]  }
  0xf7   : > { %1688 = vrot.lane.b32.xlu1 %v4336_v31, %s4059_s11  ;;  %2867 = vmatpush1.bf16.msra.mxu1 %v466_v63 }
  0xf8   : > { %1686 = vrot.lane.b32.xlu0 %v4342_v33, %s4059_s11 }
  0xf9   : > { %v1450_v18 = vpop.permute.xlu1 %1449  ;;  %v2443_v19 = vld [vmem:[#allocation2 + $0x3f8] sm:$0xff]  ;;  %v1448_v20 = vpop.permute.xlu0 %1447 }
  0xfa   : > { %1477 = vst.msk [vmem:[#allocation2 + $0x408] sm:$0xff] %vm244_vm0, %v1450_v18  ;;  %3085 = vmatprep.subr.bf16.mxu0 %v2443_v19  ;;  %2869 = vmatmul.mubr.bf16.vlgmr.msra.gmra.mrb[0].mxu1 %v3923_v14  ;;  %v1464_v7 = vsel %vm1463_vm9, %v1448_v20, %v1450_v18 }
  0xfb   : > { %768 = vrot.lane.b32.xlu1 %v4348_v4, %s4058_s10  ;;  %3086 = vmatpush1.bf16.msra.mxu0 %v1390_v11 }
  0xfc   : > { %2878 = vmatprep.mubr.bf16.mxu1 %v3938_v17  ;;  %766 = vrot.lane.b32.xlu0 %v4354_v37, %s4058_s10 }
  0xfd   : > { %v530_v22 = vpop.permute.xlu1 %529  ;;  %v2349_v23 = vld [vmem:[#allocation2 + $0x108] sm:$0xff]  ;;  %v528_v25 = vpop.permute.xlu0 %527 }
  0xfe   : > { %555 = vst.msk [vmem:[#allocation2 + $0x118] sm:$0xff] %vm244_vm0, %v530_v22  ;;  %2909 = vmatprep.subr.bf16.mxu1 %v2349_v23  ;;  %3088 = vmatmul.mubr.bf16.vlgmr.msra.gmra.mrb[0].mxu0 %v3926_v6  ;;  %v541_v3 = vsel %vm539_vm8, %v528_v25, %v530_v22 }
  0xff   : > { %1692 = vrot.lane.b32.xlu1 %v4348_v4, %s4059_s11  ;;  %2910 = vmatpush1.bf16.msra.mxu1 %v540_v16 }
 0x100   : > { %3097 = vmatprep.mubr.bf16.mxu0 %v3943_v21  ;;  %1690 = vrot.lane.b32.xlu0 %v4354_v37, %s4059_s11  ;;  %s4980_s11 = scalar_lea.vmem %s5022_s3, %s3726_s7 }
 0x101   : > { %v1454_v2 = vpop.permute.xlu1 %1453  ;;  %v2445_v27 = vld [vmem:[#allocation2 + $0x408] sm:$0xff]  ;;  %v1452_v29 = vpop.permute.xlu0 %1451 }
 0x102   : > { %1479 = vst.msk [vmem:[#allocation2 + $0x418] sm:$0xff] %vm244_vm0, %v1454_v2  ;;  %3128 = vmatprep.subr.bf16.mxu0 %v2445_v27  ;;  %2879 = vmatmul.mubr.bf16.gmra.mrb[4].mxu1 %v3942_v24  ;;  %v1465_v30 = vsel %vm1463_vm9, %v1452_v29, %v1454_v2  ;;  %v3930_v27 = vld [vmem:[%s4114_s19 + $0x20] ss:$12 sps:$4 sm:$0xff]  }
 0x103   : > { %833 = vrot.lane.b32.xlu1 %v4366_v43, %s4060_s4  ;;  %3129 = vmatpush1.bf16.msra.mxu0 %v1464_v7 }
 0x104   : > { %2888 = vmatprep.mubr.bf16.mxu1 %v3947_v26  ;;  %831 = vrot.lane.b32.xlu0 %v4372_v47, %s4060_s4 }
 0x105   : > { %v534_v0 = vpop.permute.xlu1 %533  ;;  %v2351_v32 = vld [vmem:[#allocation2 + $0x118] sm:$0xff] }
 0x106   : > { %557 = vst.msk [vmem:[#allocation2 + $0x128] sm:$0xff] %vm244_vm0, %v534_v0  ;;  %2911 = vmatprep.subr.bf16.mxu1 %v2351_v32  ;;  %3098 = vmatmul.mubr.bf16.gmra.mrb[4].mxu0 %v3945_v28  ;;  %v532_v35 = vpop.permute.xlu0 %531  ;;  %v3931_v32 = vld [vmem:[%s4114_s19 + $0x38] ss:$12 sps:$4 sm:$0xff]  }
 0x107   : > { %1757 = vrot.lane.b32.xlu1 %v4366_v43, %s4061_s9  ;;  %2912 = vmatpush1.bf16.msra.mxu1 %v541_v3  ;;  %v542_v5 = vsel %vm539_vm8, %v532_v35, %v534_v0 }
 0x108   : > { %3107 = vmatprep.mubr.bf16.mxu0 %v3950_v1  ;;  %1755 = vrot.lane.b32.xlu0 %v4372_v47, %s4061_s9 }
 0x109   : > { %v1458_v38 = vpop.permute.xlu1 %1457  ;;  %v2447_v39 = vld [vmem:[#allocation2 + $0x418] sm:$0xff] }
 0x10a   : > { %1481 = vst.msk [vmem:[#allocation2 + $0x428] sm:$0xff] %vm244_vm0, %v1458_v38  ;;  %3130 = vmatprep.subr.bf16.mxu0 %v2447_v39  ;;  %2889 = vmatmul.mubr.bf16.gmra.mrb[8].mxu1 %v3949_v34  ;;  %v1456_v41 = vpop.permute.xlu0 %1455 }
 0x10b   : > { %837 = vrot.lane.b32.xlu1 %v4384_v53, %s4060_s4  ;;  %3131 = vmatpush1.bf16.msra.mxu0 %v1465_v30  ;;  %v1466_v42 = vsel %vm1463_vm9, %v1456_v41, %v1458_v38 }
 0x10c   : > { %2898 = vmatprep.mubr.bf16.mxu1 %v3956_v36  ;;  %835 = vrot.lane.b32.xlu0 %v4390_v57, %s4060_s4 }
 0x10d   : > { %v538_v45 = vpop.permute.xlu1 %537  ;;  %v2353_v46 = vld [vmem:[#allocation2 + $0x128] sm:$0xff] }
 0x10e   : > { %559 = vst.msk [vmem:[#allocation2 + $0x138] sm:$0xff] %vm244_vm0, %v538_v45  ;;  %2913 = vmatprep.subr.bf16.mxu1 %v2353_v46  ;;  %3108 = vmatmul.mubr.bf16.gmra.mrb[8].mxu0 %v3953_v40  ;;  %v536_v49 = vpop.permute.xlu0 %535 }
 0x10f   : > { %1761 = vrot.lane.b32.xlu1 %v4384_v53, %s4061_s9  ;;  %2914 = vmatpush1.bf16.msra.mxu1 %v542_v5  ;;  %v543_v50 = vsel %vm539_vm8, %v536_v49, %v538_v45  ;;  %vm2235_vm8 = vcmask 490496  }
 0x110   : > { %3117 = vmatprep.mubr.bf16.mxu0 %v3959_v44  ;;  %1759 = vrot.lane.b32.xlu0 %v4390_v57, %s4061_s9 }
 0x111   : > { %v1462_v52 = vpop.permute.xlu1 %1461  ;;  %v2449_v54 = vld [vmem:[#allocation2 + $0x428] sm:$0xff] }
 0x112   : > { %1483 = vst.msk [vmem:[#allocation2 + $0x438] sm:$0xff] %vm244_vm0, %v1462_v52  ;;  %3132 = vmatprep.subr.bf16.mxu0 %v2449_v54  ;;  %2899 = vmatmul.mubr.bf16.gmra.mrb[12].mxu1 %v3958_v48  ;;  %v1460_v56 = vpop.permute.xlu0 %1459 }
 0x113   : > { %841 = vrot.lane.b32.xlu1 %v4336_v31, %s4060_s4  ;;  %3133 = vmatpush1.bf16.msra.mxu0 %v1466_v42  ;;  %v1467_v58 = vsel %vm1463_vm9, %v1460_v56, %v1462_v52  ;;  %v3933_v56 = vld [vmem:[%s4114_s19 + $0x8] ss:$12 sps:$4 sm:$0xff]  }
 0x114   : > { %2941 = vmatprep.mubr.bf16.mxu1 %v3966_v51  ;;  %839 = vrot.lane.b32.xlu0 %v4342_v33, %s4060_s4 }
 0x115   : > { %v603_v60 = vpop.permute.xlu1 %602  ;;  %v2355_v61 = vld [vmem:[#allocation2 + $0x138] sm:$0xff] }
 0x116   : > { %630 = vst.msk [vmem:[#allocation2 + $0x148] sm:$0xff] %vm244_vm0, %v603_v60  ;;  %2915 = vmatprep.subr.bf16.mxu1 %v2355_v61  ;;  %3118 = vmatmul.mubr.bf16.gmra.mrb[12].mxu0 %v3963_v55  ;;  %v601_v62 = vpop.permute.xlu0 %600 }
 0x117   : > { %1765 = vrot.lane.b32.xlu1 %v4336_v31, %s4061_s9  ;;  %2916 = vmatpush1.bf16.msra.mxu1 %v543_v50  ;;  %v617_v63 = vsel %vm616_vm10, %v601_v62, %v603_v60  ;;  %v3932_v50 = vld [vmem:[%s4114_s19 + $0x50] ss:$12 sps:$4 sm:$0xff]  }
 0x118   : > { %3160 = vmatprep.mubr.bf16.mxu0 %v3970_v59  ;;  %1763 = vrot.lane.b32.xlu0 %v4342_v33, %s4061_s9 }
 0x119   : > { %v1527_v8 = vpop.permute.xlu1 %1526  ;;  %v2451_v9 = vld [vmem:[#allocation2 + $0x438] sm:$0xff] }
 0x11a   : > { %1554 = vst.msk [vmem:[#allocation2 + $0x448] sm:$0xff] %vm244_vm0, %v1527_v8  ;;  %3134 = vmatprep.subr.bf16.mxu0 %v2451_v9  ;;  %v1525_v10 = vpop.permute.xlu0 %1524 }
 0x11b   : > { %845 = vrot.lane.b32.xlu1 %v4348_v4, %s4060_s4  ;;  %3135 = vmatpush1.bf16.msra.mxu0 %v1467_v58  ;;  %v1541_v11 = vsel %vm1540_vm11, %v1525_v10, %v1527_v8 }
 0x11c   : > { %843 = vrot.lane.b32.xlu0 %v4354_v37, %s4060_s4  ;;  %s4064_s4 = smov 62  }
 0x11d   : > { %v607_v12 = vpop.permute.xlu1 %606  ;;  %v2357_v13 = vld [vmem:[#allocation2 + $0x148] sm:$0xff] }
 0x11e   : > { %632 = vst.msk [vmem:[#allocation2 + $0x158] sm:$0xff] %vm244_vm0, %v607_v12  ;;  %2917 = vmatprep.subr.bf16.mxu1 %v2357_v13  ;;  %v605_v14 = vpop.permute.xlu0 %604 }
 0x11f   : > { %1769 = vrot.lane.b32.xlu1 %v4348_v4, %s4061_s9  ;;  %2918 = vmatpush1.bf16.msra.mxu1 %v617_v63  ;;  %v618_v16 = vsel %vm616_vm10, %v605_v14, %v607_v12  ;;  %v3934_v14 = vld [vmem:[%s4114_s19 + $0x20] ss:$12 sps:$4 sm:$0xff]  }
 0x120   : > { %1767 = vrot.lane.b32.xlu0 %v4354_v37, %s4061_s9  ;;  %s4067_s9 = smov 95  }
 0x121   : > { %v1531_v17 = vpop.permute.xlu1 %1530  ;;  %v2453_v18 = vld [vmem:[#allocation2 + $0x448] sm:$0xff] }
 0x122   : > { %1556 = vst.msk [vmem:[#allocation2 + $0x458] sm:$0xff] %vm244_vm0, %v1531_v17  ;;  %3136 = vmatprep.subr.bf16.mxu0 %v2453_v18  ;;  %v1529_v19 = vpop.permute.xlu0 %1528 }
 0x123   : > { %1864 = vrot.lane.b32.xlu1 %v3929_v15, %s4062_s29  ;;  %3137 = vmatpush1.bf16.msra.mxu0 %v1541_v11  ;;  %v1542_v6 = vsel %vm1540_vm11, %v1529_v19, %v1531_v17  ;;  %v3935_v19 = vld [vmem:[%s4114_s19 + $0x38] ss:$12 sps:$4 sm:$0xff]  }
 0x124   : > { %1862 = vrot.lane.b32.xlu0 %v4366_v43, %s4062_s29 }
 0x125   : > { %v611_v20 = vpop.permute.xlu1 %610  ;;  %v2359_v7 = vld [vmem:[#allocation2 + $0x158] sm:$0xff] }
 0x126   : > { %634 = vst.msk [vmem:[#allocation2 + $0x168] sm:$0xff] %vm244_vm0, %v611_v20  ;;  %2919 = vmatprep.subr.bf16.mxu1 %v2359_v7  ;;  %v609_v21 = vpop.permute.xlu0 %608 }
 0x127   : > { %910 = vrot.lane.b32.xlu1 %v4366_v43, %s4063_s30  ;;  %2920 = vmatpush1.bf16.msra.mxu1 %v618_v16  ;;  %v619_v22 = vsel %vm616_vm10, %v609_v21, %v611_v20  ;;  %v4616_v21 = vld [vmem:[%s4114_s19 + $0x34] ss:$12 sps:$4 sm:$0xff]  }
 0x128   : > { %908 = vrot.lane.b32.xlu0 %v4372_v47, %s4063_s30 }
 0x129   : > { %v1535_v23 = vpop.permute.xlu1 %1534  ;;  %v2455_v24 = vld [vmem:[#allocation2 + $0x458] sm:$0xff] }
 0x12a   : > { %1558 = vst.msk [vmem:[#allocation2 + $0x468] sm:$0xff] %vm244_vm0, %v1535_v23  ;;  %3138 = vmatprep.subr.bf16.mxu0 %v2455_v24  ;;  %v1533_v25 = vpop.permute.xlu0 %1532 }
 0x12b   : > { %1868 = vrot.lane.b32.xlu1 %v4384_v53, %s4062_s29  ;;  %3139 = vmatpush1.bf16.msra.mxu0 %v1542_v6  ;;  %v1543_v3 = vsel %vm1540_vm11, %v1533_v25, %v1535_v23  ;;  %v1919_v23 = vld [vmem:[%s4114_s19 + $0x3c] sm:$0xff] }
 0x12c   : > { %1860 = vrot.lane.b32.xlu0 %v4372_v47, %s4062_s29 }
 0x12d   : > { %v615_v26 = vpop.permute.xlu1 %614  ;;  %v2361_v2 = vld [vmem:[#allocation2 + $0x168] sm:$0xff] }
 0x12e   : > { %636 = vst.msk [vmem:[#allocation2 + $0x178] sm:$0xff] %vm244_vm0, %v615_v26  ;;  %2921 = vmatprep.subr.bf16.mxu1 %v2361_v2  ;;  %v613_v28 = vpop.permute.xlu0 %612  ;;  %v4631_v2 = vld [vmem:[%s4114_s19 + $0x4c] ss:$12 sps:$4 sm:$0xff]  }
 0x12f   : > { %912 = vrot.lane.b32.xlu1 %v4390_v57, %s4063_s30  ;;  %2922 = vmatpush1.bf16.msra.mxu1 %v619_v22  ;;  %v620_v29 = vsel %vm616_vm10, %v613_v28, %v615_v26  ;;  %v1917_v22 = vld [vmem:[%s4114_s19 + $0x30] sm:$0xff]  ;;  %v1921_v28 = vld [vmem:[%s4114_s19 + $0x48] sm:$0xff] }
 0x130   : > { %1870 = vrot.lane.b32.xlu0 %v3930_v27, %s4062_s29 }
 0x131   : > { %v1539_v30 = vpop.permute.xlu1 %1538  ;;  %v2457_v1 = vld [vmem:[#allocation2 + $0x468] sm:$0xff] }
 0x132   : > { %1560 = vst.msk [vmem:[#allocation2 + $0x478] sm:$0xff] %vm244_vm0, %v1539_v30  ;;  %3140 = vmatprep.subr.bf16.mxu0 %v2457_v1  ;;  %v1537_v0 = vpop.permute.xlu0 %1536 }
 0x133   : > { %1866 = vrot.lane.b32.xlu1 %v4390_v57, %s4062_s29  ;;  %3141 = vmatpush1.bf16.msra.mxu0 %v1543_v3  ;;  %v1544_v34 = vsel %vm1540_vm11, %v1537_v0, %v1539_v30  ;;  %v4625_v3 = vcombine.low %v1917_v22, %v1919_v23  ;;  %v3983_v22 = vld [vmem:[%s5019_s0 + $0xf4] ss:$52 sps:$4 sm:$0xff]  }
 0x134   : > { %914 = vrot.lane.b32.xlu0 %v4384_v53, %s4063_s30 }
 0x135   : > { %v680_v35 = vpop.permute.xlu1 %679  ;;  %v2363_v5 = vld [vmem:[#allocation2 + $0x178] sm:$0xff] }
 0x136   : > { %707 = vst.msk [vmem:[#allocation2 + $0x188] sm:$0xff] %vm244_vm0, %v680_v35  ;;  %2923 = vmatprep.subr.bf16.mxu1 %v2363_v5  ;;  %v678_v36 = vpop.permute.xlu0 %677 }
 0x137   : > { %1876 = vrot.lane.b32.xlu1 %v3931_v32, %s4062_s29  ;;  %2924 = vmatpush1.bf16.msra.mxu1 %v620_v29  ;;  %v694_v38 = vsel %vm693_vm12, %v678_v36, %v680_v35  ;;  %v1923_v29 = vld [vmem:[%s4114_s19 + $0x54] sm:$0xff]  ;;  %v3946_v36 = vld [vmem:[%s4114_s19 + $0x50] ss:$12 sps:$4 sm:$0xff]  }
 0x138   : > { %1874 = vrot.lane.b32.xlu0 %v4336_v31, %s4062_s29  ;;  %v4641_v32 = vcombine.low %v1921_v28, %v1923_v29 }
 0x139   : > { %v1604_v39 = vpop.permute.xlu1 %1603  ;;  %v2459_v40 = vld [vmem:[#allocation2 + $0x478] sm:$0xff] }
 0x13a   : > { %1631 = vst.msk [vmem:[#allocation2 + $0x488] sm:$0xff] %vm244_vm0, %v1604_v39  ;;  %3142 = vmatprep.subr.bf16.mxu0 %v2459_v40  ;;  %v1602_v41 = vpop.permute.xlu0 %1601 }
 0x13b   : > { %918 = vrot.lane.b32.xlu1 %v4336_v31, %s4063_s30  ;;  %3143 = vmatpush1.bf16.msra.mxu0 %v1544_v34  ;;  %v1618_v42 = vsel %vm1617_vm13, %v1602_v41, %v1604_v39 }
 0x13c   : > { %916 = vrot.lane.b32.xlu0 %v4342_v33, %s4063_s30 }
 0x13d   : > { %v684_v44 = vpop.permute.xlu1 %683  ;;  %v2365_v45 = vld [vmem:[#allocation2 + $0x188] sm:$0xff] }
 0x13e   : > { %709 = vst.msk [vmem:[#allocation2 + $0x198] sm:$0xff] %vm244_vm0, %v684_v44  ;;  %2925 = vmatprep.subr.bf16.mxu1 %v2365_v45  ;;  %v682_v46 = vpop.permute.xlu0 %681 }
 0x13f   : > { %1880 = vrot.lane.b32.xlu1 %v4348_v4, %s4062_s29  ;;  %2926 = vmatpush1.bf16.msra.mxu1 %v694_v38  ;;  %v695_v48 = vsel %vm693_vm12, %v682_v46, %v684_v44  ;;  %v3952_v44 = vld [vmem:[%s4114_s19 + $0x8] ss:$12 sps:$4 sm:$0xff]  }
 0x140   : > { %1872 = vrot.lane.b32.xlu0 %v4342_v33, %s4062_s29 }
 0x141   : > { %v1608_v31 = vpop.permute.xlu1 %1607  ;;  %v2461_v49 = vld [vmem:[#allocation2 + $0x488] sm:$0xff] }
 0x142   : > { %1633 = vst.msk [vmem:[#allocation2 + $0x498] sm:$0xff] %vm244_vm0, %v1608_v31  ;;  %3144 = vmatprep.subr.bf16.mxu0 %v2461_v49  ;;  %v1606_v51 = vpop.permute.xlu0 %1605  ;;  %v2026_v49 = vld [vmem:[%s4114_s19] sm:$0xff] }
 0x143   : > { %920 = vrot.lane.b32.xlu1 %v4354_v37, %s4063_s30  ;;  %3145 = vmatpush1.bf16.msra.mxu0 %v1618_v42  ;;  %v1619_v52 = vsel %vm1617_vm13, %v1606_v51, %v1608_v31  ;;  %v4660_v31 = vld [vmem:[%s4114_s19 + $0x4] ss:$12 sps:$4 sm:$0xff]  }
 0x144   : > { %1882 = vrot.lane.b32.xlu0 %v3932_v50, %s4062_s29  ;;  %v2028_v50 = vld [vmem:[%s4114_s19 + $0xc] sm:$0xff] }
 0x145   : > { %v688_v54 = vpop.permute.xlu1 %687  ;;  %v2367_v55 = vld [vmem:[#allocation2 + $0x198] sm:$0xff] }
 0x146   : > { %711 = vst.msk [vmem:[#allocation2 + $0x1a8] sm:$0xff] %vm244_vm0, %v688_v54  ;;  %2927 = vmatprep.subr.bf16.mxu1 %v2367_v55  ;;  %v686_v33 = vpop.permute.xlu0 %685 }
 0x147   : > { %1878 = vrot.lane.b32.xlu1 %v4354_v37, %s4062_s29  ;;  %2928 = vmatpush1.bf16.msra.mxu1 %v695_v48  ;;  %v696_v58 = vsel %vm693_vm12, %v686_v33, %v688_v54  ;;  %v4669_v33 = vcombine.low %v2026_v49, %v2028_v50 }
 0x148   : > { %922 = vrot.lane.b32.xlu0 %v4348_v4, %s4063_s30 }
 0x149   : > { %v1612_v59 = vpop.permute.xlu1 %1611  ;;  %v2463_v60 = vld [vmem:[#allocation2 + $0x498] sm:$0xff] }
 0x14a   : > { %1635 = vst.msk [vmem:[#allocation2 + $0x4a8] sm:$0xff] %vm244_vm0, %v1612_v59  ;;  %3146 = vmatprep.subr.bf16.mxu0 %v2463_v60  ;;  %v1610_v61 = vpop.permute.xlu0 %1609 }
 0x14b   : > { %1981 = vrot.lane.b32.xlu1 %v3933_v56, %s4064_s4  ;;  %3147 = vmatpush1.bf16.msra.mxu0 %v1619_v52  ;;  %v1620_v62 = vsel %vm1617_vm13, %v1610_v61, %v1612_v59  ;;  %v3964_v56 = vld [vmem:[%s5019_s0 + $0x8] ss:$52 sps:$4 sm:$0xff]  }
 0x14c   : > { %1979 = vrot.lane.b32.xlu0 %v4366_v43, %s4064_s4  ;;  %v4678_v59 = vld [vmem:[%s4114_s19 + $0x1c] ss:$12 sps:$4 sm:$0xff]  }
 0x14d   : > { %v692_v37 = vpop.permute.xlu1 %691  ;;  %v2369_v63 = vld [vmem:[#allocation2 + $0x1a8] sm:$0xff]  ;;  %v2030_v61 = vld [vmem:[%s4114_s19 + $0x18] sm:$0xff] }
 0x14e   : > { %713 = vst.msk [vmem:[#allocation2 + $0x1b8] sm:$0xff] %vm244_vm0, %v692_v37  ;;  %2929 = vmatprep.subr.bf16.mxu1 %v2369_v63  ;;  %v690_v4 = vpop.permute.xlu0 %689 }
 0x14f   : > { %987 = vrot.lane.b32.xlu1 %v4366_v43, %s4065_s5  ;;  %2930 = vmatpush1.bf16.msra.mxu1 %v696_v58  ;;  %v697_v8 = vsel %vm693_vm12, %v690_v4, %v692_v37  ;;  %v3968_v4 = vld [vmem:[%s5019_s0 + $0x20] ss:$52 sps:$4 sm:$0xff]  }
 0x150   : > { %985 = vrot.lane.b32.xlu0 %v4372_v47, %s4065_s5 }
 0x151   : > { %v1616_v9 = vpop.permute.xlu1 %1615  ;;  %v2465_v10 = vld [vmem:[#allocation2 + $0x4a8] sm:$0xff] }
 0x152   : > { %1637 = vst.msk [vmem:[#allocation2 + $0x4b8] sm:$0xff] %vm244_vm0, %v1616_v9  ;;  %3148 = vmatprep.subr.bf16.mxu0 %v2465_v10  ;;  %v1614_v11 = vpop.permute.xlu0 %1613 }
 0x153   : > { %1985 = vrot.lane.b32.xlu1 %v4384_v53, %s4064_s4  ;;  %3149 = vmatpush1.bf16.msra.mxu0 %v1620_v62  ;;  %v1621_v12 = vsel %vm1617_vm13, %v1614_v11, %v1616_v9  ;;  %v2032_v62 = vld [vmem:[%s4114_s19 + $0x24] sm:$0xff]  ;;  %v3977_v11 = vld [vmem:[%s5019_s0 + $0x8c] ss:$52 sps:$4 sm:$0xff]  }
 0x154   : > { %1977 = vrot.lane.b32.xlu0 %v4372_v47, %s4064_s4  ;;  %v4691_v9 = vcombine.low %v2030_v61, %v2032_v62 }
 0x155   : > { %v757_v43 = vpop.permute.xlu1 %756  ;;  %v2371_v13 = vld [vmem:[#allocation2 + $0x1b8] sm:$0xff] }
 0x156   : > { %784 = vst.msk [vmem:[#allocation2 + $0x1c8] sm:$0xff] %vm244_vm0, %v757_v43  ;;  %2931 = vmatprep.subr.bf16.mxu1 %v2371_v13  ;;  %v755_v15 = vpop.permute.xlu0 %754  ;;  %v3967_v13 = vld [vmem:[%s4114_s19 + $0x20] ss:$12 sps:$4 sm:$0xff]  }
 0x157   : > { %989 = vrot.lane.b32.xlu1 %v4390_v57, %s4065_s5  ;;  %2932 = vmatpush1.bf16.msra.mxu1 %v697_v8  ;;  %v771_v16 = vsel %vm770_vm14, %v755_v15, %v757_v43  ;;  %v3981_v15 = vld [vmem:[%s5019_s0 + $0x70] ss:$52 sps:$4 sm:$0xff]  }
 0x158   : > { %1987 = vrot.lane.b32.xlu0 %v3934_v14, %s4064_s4  ;;  %v3979_v14 = vld [vmem:[%s5019_s0 + $0x74] ss:$52 sps:$4 sm:$0xff]  }
 0x159   : > { %v1681_v17 = vpop.permute.xlu1 %1680  ;;  %v2467_v47 = vld [vmem:[#allocation2 + $0x4b8] sm:$0xff] }
 0x15a   : > { %1708 = vst.msk [vmem:[#allocation2 + $0x4c8] sm:$0xff] %vm244_vm0, %v1681_v17  ;;  %3150 = vmatprep.subr.bf16.mxu0 %v2467_v47  ;;  %v1679_v18 = vpop.permute.xlu0 %1678 }
 0x15b   : > { %1983 = vrot.lane.b32.xlu1 %v4390_v57, %s4064_s4  ;;  %3151 = vmatpush1.bf16.msra.mxu0 %v1621_v12  ;;  %v1695_v6 = vsel %vm1694_vm15, %v1679_v18, %v1681_v17 }
 0x15c   : > { %991 = vrot.lane.b32.xlu0 %v4384_v53, %s4065_s5 }
 0x15d   : > { %v761_v20 = vpop.permute.xlu1 %760  ;;  %v2373_v7 = vld [vmem:[#allocation2 + $0x1c8] sm:$0xff] }
 0x15e   : > { %786 = vst.msk [vmem:[#allocation2 + $0x1d8] sm:$0xff] %vm244_vm0, %v761_v20  ;;  %2933 = vmatprep.subr.bf16.mxu1 %v2373_v7  ;;  %v759_v24 = vpop.permute.xlu0 %758 }
 0x15f   : > { %1993 = vrot.lane.b32.xlu1 %v3935_v19, %s4064_s4  ;;  %2934 = vmatpush1.bf16.msra.mxu1 %v771_v16  ;;  %v772_v57 = vsel %vm770_vm14, %v759_v24, %v761_v20  ;;  %v3982_v19 = vld [vmem:[%s5019_s0 + $0x88] ss:$52 sps:$4 sm:$0xff]   ;;  %v3971_v20 = vld [vmem:[%s4114_s19 + $0x38] ss:$12 sps:$4 sm:$0xff]  }
 0x160   : > { %1991 = vrot.lane.b32.xlu0 %v4616_v21, %s4064_s4 }
 0x161   : > { %v1685_v53 = vpop.permute.xlu1 %1684  ;;  %v2469_v25 = vld [vmem:[#allocation2 + $0x4c8] sm:$0xff] }
 0x162   : > { %1710 = vst.msk [vmem:[#allocation2 + $0x4d8] sm:$0xff] %vm244_vm0, %v1685_v53  ;;  %3152 = vmatprep.subr.bf16.mxu0 %v2469_v25  ;;  %v1683_v26 = vpop.permute.xlu0 %1682 }
 0x163   : > { %995 = vrot.lane.b32.xlu1 %v4616_v21, %s4065_s5  ;;  %3153 = vmatpush1.bf16.msra.mxu0 %v1695_v6  ;;  %v1696_v27 = vsel %vm1694_vm15, %v1683_v26, %v1685_v53  ;;  %v3987_v53 = vld [vmem:[%s5019_s0 + $0xd8] ss:$52 sps:$4 sm:$0xff]   ;;  %v2292_v26 = vld [vmem:[%s5019_s0 + $0xf0] sm:$0xff] }
 0x164   : > { %993 = vrot.lane.b32.xlu0 %v4625_v3, %s4065_s5 }
 0x165   : > { %v765_v30 = vpop.permute.xlu1 %764  ;;  %v2375_v1 = vld [vmem:[#allocation2 + $0x1d8] sm:$0xff] }
 0x166   : > { %788 = vst.msk [vmem:[#allocation2 + $0x1e8] sm:$0xff] %vm244_vm0, %v765_v30  ;;  %2935 = vmatprep.subr.bf16.mxu1 %v2375_v1  ;;  %v763_v0 = vpop.permute.xlu0 %762 }
 0x167   : > { %1997 = vrot.lane.b32.xlu1 %v4631_v2, %s4064_s4  ;;  %2936 = vmatpush1.bf16.msra.mxu1 %v772_v57  ;;  %v773_v34 = vsel %vm770_vm14, %v763_v0, %v765_v30  ;;  %v3985_v57 = vld [vmem:[%s5019_s0 + $0xdc] ss:$52 sps:$4 sm:$0xff]  }
 0x168   : > { %1989 = vrot.lane.b32.xlu0 %v4625_v3, %s4064_s4 }
 0x169   : > { %v1689_v35 = vpop.permute.xlu1 %1688  ;;  %v2471_v5 = vld [vmem:[#allocation2 + $0x4d8] sm:$0xff] }
 0x16a   : > { %1712 = vst.msk [vmem:[#allocation2 + $0x4e8] sm:$0xff] %vm244_vm0, %v1689_v35  ;;  %3154 = vmatprep.subr.bf16.mxu0 %v2471_v5  ;;  %v1687_v38 = vpop.permute.xlu0 %1686 }
 0x16b   : > { %997 = vrot.lane.b32.xlu1 %v4641_v32, %s4065_s5  ;;  %3155 = vmatpush1.bf16.msra.mxu0 %v1696_v27  ;;  %v1697_v39 = vsel %vm1694_vm15, %v1687_v38, %v1689_v35  ;;  %v2299_v27 = vld [vmem:[%s5019_s0 + $0x124] sm:$0xff]  ;;  %v3988_v35 = vld [vmem:[%s5019_s0 + $0x15c] ss:$52 sps:$4 sm:$0xff]  }
 0x16c   : > { %1999 = vrot.lane.b32.xlu0 %v3946_v36, %s4064_s4  ;;  %v3702_v1 = vcombine.low %v2292_v26, %v2299_v27  ;;  %v3990_v38 = vld [vmem:[%s5019_s0 + $0x144] ss:$52 sps:$4 sm:$0xff]  }
 0x16d   : > { %v769_v40 = vpop.permute.xlu1 %768  ;;  %v2377_v41 = vld [vmem:[#allocation2 + $0x1e8] sm:$0xff] }
 0x16e   : > { %790 = vst.msk [vmem:[#allocation2 + $0x1f8] sm:$0xff] %vm244_vm0, %v769_v40  ;;  %2937 = vmatprep.subr.bf16.mxu1 %v2377_v41  ;;  %v767_v42 = vpop.permute.xlu0 %766  ;;  %v2306_v41 = vld [vmem:[%s5019_s0 + $0x158] sm:$0xff] }
 0x16f   : > { %1995 = vrot.lane.b32.xlu1 %v4641_v32, %s4064_s4  ;;  %2938 = vmatpush1.bf16.msra.mxu1 %v773_v34  ;;  %v774_v45 = vsel %vm770_vm14, %v767_v42, %v769_v40  ;;  %v2313_v42 = vld [vmem:[%s5019_s0 + $0x18c] sm:$0xff] }
 0x170   : > { %999 = vrot.lane.b32.xlu0 %v4631_v2, %s4065_s5  ;;  %v3715_v49 = vcombine.low %v2306_v41, %v2313_v42 }
 0x171   : > { %v1693_v46 = vpop.permute.xlu1 %1692  ;;  %v2473_v48 = vld [vmem:[#allocation2 + $0x4e8] sm:$0xff] }
 0x172   : > { %1714 = vst.msk [vmem:[#allocation2 + $0x4f8] sm:$0xff] %vm244_vm0, %v1693_v46  ;;  %3156 = vmatprep.subr.bf16.mxu0 %v2473_v48  ;;  %v1691_v51 = vpop.permute.xlu0 %1690  ;;  %v3972_v48 = vld [vmem:[%s4114_s19 + $0x50] ss:$12 sps:$4 sm:$0xff]  }
 0x173   : > { %2098 = vrot.lane.b32.xlu1 %v3952_v44, %s4066_s6  ;;  %3157 = vmatpush1.bf16.msra.mxu0 %v1697_v39  ;;  %v1698_v52 = vsel %vm1694_vm15, %v1691_v51, %v1693_v46  ;;  %v3992_v39 = vld [vmem:[%s5019_s0 + $0x140] ss:$52 sps:$4 sm:$0xff]  }
 0x174   : > { %2096 = vrot.lane.b32.xlu0 %v4660_v31, %s4066_s6 }
 0x175   : > { %v834_v54 = vpop.permute.xlu1 %833  ;;  %v2379_v55 = vld [vmem:[#allocation2 + $0x1f8] sm:$0xff] }
 0x176   : > { %861 = vst.msk [vmem:[#allocation2 + $0x208] sm:$0xff] %vm244_vm0, %v834_v54  ;;  %2939 = vmatprep.subr.bf16.mxu1 %v2379_v55  ;;  %v832_v58 = vpop.permute.xlu0 %831 }
 0x177   : > { %1064 = vrot.lane.b32.xlu1 %v4660_v31, %s4067_s9  ;;  %2940 = vmatpush1.bf16.msra.mxu1 %v774_v45  ;;  %v848_v60 = vsel %vm847_vm1, %v832_v58, %v834_v54 }
 0x178   : > { %1062 = vrot.lane.b32.xlu0 %v4669_v33, %s4067_s9 }
 0x179   : > { %v1758_v37 = vpop.permute.xlu1 %1757  ;;  %v2475_v63 = vld [vmem:[#allocation2 + $0x4f8] sm:$0xff] }
 0x17a   : > { %1785 = vst.msk [vmem:[#allocation2 + $0x508] sm:$0xff] %vm244_vm0, %v1758_v37  ;;  %3158 = vmatprep.subr.bf16.mxu0 %v2475_v63  ;;  %2942 = vmatmul.mubr.bf16.vlgmr.msra.gmra.mrb[0].mxu1 %v3964_v56  ;;  %v1756_v8 = vpop.permute.xlu0 %1755  ;;  %v3998_v56 = vld [vmem:[%s5019_s0 + $0x14] ss:$52 sps:$4 sm:$0xff]  }
 0x17b   : > { %2102 = vrot.lane.b32.xlu1 %v4678_v59, %s4066_s6  ;;  %3159 = vmatpush1.bf16.msra.mxu0 %v1698_v52  ;;  %v1772_v10 = vsel %vm244_vm0, %v1756_v8, %v1758_v37  ;;  %v3995_v52 = vld [vmem:[%s5019_s0 + $0x2c] ss:$52 sps:$4 sm:$0xff]  }
 0x17c   : > { %2094 = vrot.lane.b32.xlu0 %v4669_v33, %s4066_s6  ;;  %2951 = vmatprep.mubr.bf16.mxu1 %v3979_v14  ;;  %v3974_v14 = vld [vmem:[%s4114_s19 + $0x20] ss:$12 sps:$4 sm:$0xff]  }
 0x17d   : > { %v838_v12 = vpop.permute.xlu1 %837  ;;  %v2381_v43 = vld [vmem:[#allocation2 + $0x208] sm:$0xff] }
 0x17e   : > { %863 = vst.msk [vmem:[#allocation2 + $0x218] sm:$0xff] %vm244_vm0, %v838_v12  ;;  %2982 = vmatprep.subr.bf16.mxu1 %v2381_v43  ;;  %3161 = vmatmul.mubr.bf16.vlgmr.msra.gmra.mrb[0].mxu0 %v3968_v4  ;;  %v836_v16 = vpop.permute.xlu0 %835 }
 0x17f   : > { %1066 = vrot.lane.b32.xlu1 %v4691_v9, %s4067_s9  ;;  %2983 = vmatpush1.bf16.msra.mxu1 %v848_v60  ;;  %v849_v17 = vsel %vm847_vm1, %v836_v16, %v838_v12  ;;  %v3973_v60 = vld [vmem:[%s4114_s19 + $0x8] ss:$12 sps:$4 sm:$0xff]  }
 0x180   : > { %3170 = vmatprep.mubr.bf16.mxu0 %v3977_v11  ;;  %2104 = vrot.lane.b32.xlu0 %v3967_v13, %s4066_s6 }
 0x181   : > { %v1762_v47 = vpop.permute.xlu1 %1761  ;;  %v2477_v18 = vld [vmem:[#allocation2 + $0x508] sm:$0xff] }
 0x182   : > { %1787 = vst.msk [vmem:[#allocation2 + $0x518] sm:$0xff] %vm244_vm0, %v1762_v47  ;;  %3201 = vmatprep.subr.bf16.mxu0 %v2477_v18  ;;  %2952 = vmatmul.mubr.bf16.gmra.mrb[4].mxu1 %v3981_v15  ;;  %v1760_v6 = vpop.permute.xlu0 %1759 }
 0x183   : > { %2100 = vrot.lane.b32.xlu1 %v4691_v9, %s4066_s6  ;;  %3202 = vmatpush1.bf16.msra.mxu0 %v1772_v10  ;;  %v1773_v7 = vsel %vm244_vm0, %v1760_v6, %v1762_v47 }
 0x184   : > { %1068 = vrot.lane.b32.xlu0 %v4678_v59, %s4067_s9  ;;  %2961 = vmatprep.mubr.bf16.mxu1 %v3985_v57 }
 0x185   : > { %v842_v23 = vpop.permute.xlu1 %841  ;;  %v2383_v24 = vld [vmem:[#allocation2 + $0x218] sm:$0xff] }
 0x186   : > { %865 = vst.msk [vmem:[#allocation2 + $0x228] sm:$0xff] %vm244_vm0, %v842_v23  ;;  %2984 = vmatprep.subr.bf16.mxu1 %v2383_v24  ;;  %3171 = vmatmul.mubr.bf16.gmra.mrb[4].mxu0 %v3982_v19  ;;  %v840_v25 = vpop.permute.xlu0 %839  ;;  %v4069_v24 = vmov 0  }
 0x187   : > { %2110 = vrot.lane.b32.xlu1 %v3971_v20, %s4066_s6  ;;  %2985 = vmatpush1.bf16.msra.mxu1 %v849_v17  ;;  %v850_v28 = vsel %vm847_vm1, %v840_v25, %v842_v23 }
 0x188   : > { %3180 = vmatprep.mubr.bf16.mxu0 %v3983_v22  ;;  %2108 = vrot.lane.b32.xlu0 %v4616_v21, %s4066_s6 }
 0x189   : > { %v1766_v29 = vpop.permute.xlu1 %1765  ;;  %v2479_v30 = vld [vmem:[#allocation2 + $0x518] sm:$0xff]  ;;  %3898 = vset.pattern.permute.xlu1 %v4069_v24  ;;  %3897 = vset.pattern.permute.xlu0 %v4069_v24 }
 0x18a   : > { %1789 = vst.msk [vmem:[#allocation2 + $0x528] sm:$0xff] %vm244_vm0, %v1766_v29  ;;  %3203 = vmatprep.subr.bf16.mxu0 %v2479_v30  ;;  %2962 = vmatmul.mubr.bf16.gmra.mrb[8].mxu1 %v3987_v53  ;;  %v1764_v0 = vpop.permute.xlu0 %1763 }
 0x18b   : > { %1072 = vrot.lane.b32.xlu1 %v4616_v21, %s4067_s9  ;;  %3204 = vmatpush1.bf16.msra.mxu0 %v1773_v7  ;;  %v1774_v34 = vsel %vm244_vm0, %v1764_v0, %v1766_v29  ;;  %v3976_v7 = vld [vmem:[%s4114_s19 + $0x50] ss:$12 sps:$4 sm:$0xff]  }
 0x18c   : > { %1070 = vrot.lane.b32.xlu0 %v4625_v3, %s4067_s9  ;;  %2971 = vmatprep.mubr.bf16.mxu1 %v3990_v38  ;;  %v2520_v38 = vld [vmem:[%s5020_s1 + $0x20] sm:$0xff] }
 0x18d   : > { %v846_v5 = vpop.permute.xlu1 %845  ;;  %v2385_v36 = vld [vmem:[#allocation2 + $0x228] sm:$0xff] }
 0x18e   : > { %867 = vst.msk [vmem:[#allocation2 + $0x238] sm:$0xff] %vm244_vm0, %v846_v5  ;;  %2986 = vmatprep.subr.bf16.mxu1 %v2385_v36  ;;  %3181 = vmatmul.mubr.bf16.gmra.mrb[8].mxu0 %v3702_v1  ;;  %v844_v40 = vpop.permute.xlu0 %843  ;;  %v2521_v36 = vld [vmem:[%s5020_s1 + $0x28] sm:$0xff] }
 0x18f   : > { %2114 = vrot.lane.b32.xlu1 %v4631_v2, %s4066_s6  ;;  %2987 = vmatpush1.bf16.msra.mxu1 %v850_v28  ;;  %v851_v44 = vsel %vm847_vm1, %v844_v40, %v846_v5  ;;  %v2522_v40 = vld [vmem:[%s5020_s1 + $0x30] sm:$0xff] }
 0x190   : > { %3190 = vmatprep.mubr.bf16.mxu0 %v3988_v35  ;;  %2106 = vrot.lane.b32.xlu0 %v4625_v3, %s4066_s6 }
 0x191   : > { %v1770_v45 = vpop.permute.xlu1 %1769  ;;  %v2481_v46 = vld [vmem:[#allocation2 + $0x528] sm:$0xff] }
 0x192   : > { %1791 = vst.msk [vmem:[#allocation2 + $0x538] sm:$0xff] %vm244_vm0, %v1770_v45  ;;  %3205 = vmatprep.subr.bf16.mxu0 %v2481_v46  ;;  %2972 = vmatmul.mubr.bf16.gmra.mrb[12].mxu1 %v3992_v39  ;;  %v1768_v50 = vpop.permute.xlu0 %1767 }
 0x193   : > { %1074 = vrot.lane.b32.xlu1 %v4641_v32, %s4067_s9  ;;  %3206 = vmatpush1.bf16.msra.mxu0 %v1774_v34  ;;  %v1775_v51 = vsel %vm244_vm0, %v1768_v50, %v1770_v45 }
 0x194   : > { %2116 = vrot.lane.b32.xlu0 %v3972_v48, %s4066_s6  ;;  %3014 = vmatprep.mubr.bf16.mxu1 %v3998_v56  ;;  %v2516_v48 = vld [vmem:[%s5020_s1] sm:$0xff]  ;;  %v2518_v56 = vld [vmem:[%s5020_s1 + $0x10] sm:$0xff] }
 0x195   : > { %v1865_v54 = vpop.permute.xlu1 %1864  ;;  %v2387_v55 = vld [vmem:[#allocation2 + $0x238] sm:$0xff] }
 0x196   : > { %2988 = vmatprep.subr.bf16.mxu1 %v2387_v55  ;;  %3191 = vmatmul.mubr.bf16.gmra.mrb[12].mxu0 %v3715_v49  ;;  %v1863_v58 = vpop.permute.xlu0 %1862 }
 0x197   : > { %2112 = vrot.lane.b32.xlu1 %v4641_v32, %s4066_s6  ;;  %2989 = vmatpush1.bf16.msra.mxu1 %v851_v44  ;;  %v1886_v61 = vsel %vm1884_vm2, %v1863_v58, %v1865_v54  ;;  %s4068_s6 = smov 60   ;;  %v2523_v44 = vld [vmem:[%s5020_s1 + $0x38] sm:$0xff] }
 0x198   : > { %3233 = vmatprep.mubr.bf16.mxu0 %v3995_v52  ;;  %1902 = vst.msk [vmem:[#allocation2 + $0x548] sm:$0xff] %vm244_vm0, %v1886_v61  ;;  %1076 = vrot.lane.b32.xlu0 %v4631_v2, %s4067_s9  ;;  %v2517_v52 = vld [vmem:[%s5020_s1 + $0x8] sm:$0xff]  ;;  %v2519_v61 = vld [vmem:[%s5020_s1 + $0x18] sm:$0xff] }
 0x199   : > { %v911_v62 = vpop.permute.xlu1 %910  ;;  %v2483_v37 = vld [vmem:[#allocation2 + $0x538] sm:$0xff] }
 0x19a   : > { %938 = vst.msk [vmem:[#allocation2 + $0x248] sm:$0xff] %vm244_vm0, %v911_v62  ;;  %3207 = vmatprep.subr.bf16.mxu0 %v2483_v37  ;;  %v909_v63 = vpop.permute.xlu0 %908 }
 0x19b   : > { %2215 = vrot.lane.b32.xlu1 %v3973_v60, %s4068_s6  ;;  %3208 = vmatpush1.bf16.msra.mxu0 %v1775_v51  ;;  %v925_v4 = vsel %vm924_vm3, %v909_v63, %v911_v62 }
 0x19c   : > { %2213 = vrot.lane.b32.xlu0 %v4660_v31, %s4068_s6  ;;  %v3975_v31 = vld [vmem:[%s4114_s19 + $0x38] ss:$12 sps:$4 sm:$0xff]  }
 0x19d   : > { %v1869_v8 = vpop.permute.xlu1 %1868 }
 0x19e   : > { %v1861_v10 = vpop.permute.xlu0 %1860 }
 0x19f   : > { %2219 = vrot.lane.b32.xlu1 %v4678_v59, %s4068_s6  ;;  %v1885_v11 = vsel %vm1884_vm2, %v1861_v10, %v1863_v58  ;;  %v2485_v12 = vld [vmem:[#allocation2 + $0x548] sm:$0xff] }
 0x1a0   : > { %2211 = vrot.lane.b32.xlu0 %v4669_v33, %s4068_s6  ;;  %3209 = vmatprep.subr.bf16.mxu0 %v2485_v12 }
 0x1a1   : > { %v913_v43 = vpop.permute.xlu1 %912  ;;  %v2389_v13 = vld [vmem:[#allocation2 + $0x248] sm:$0xff]  ;;  %3210 = vmatpush1.bf16.msra.mxu0 %v1885_v11 }
 0x1a2   : > { %2990 = vmatprep.subr.bf16.mxu1 %v2389_v13  ;;  %v1871_v15 = vpop.permute.xlu0 %1870 }
 0x1a3   : > { %2217 = vrot.lane.b32.xlu1 %v4691_v9, %s4068_s6  ;;  %2991 = vmatpush1.bf16.msra.mxu1 %v925_v4  ;;  %v1888_v59 = vsel %vm1884_vm2, %v1869_v8, %v1871_v15 }
 0x1a4   : > { %1904 = vst.msk [vmem:[#allocation2 + $0x558] sm:$0xff] %vm244_vm0, %v1888_v59  ;;  %2221 = vrot.lane.b32.xlu0 %v3974_v14, %s4068_s6 }
 0x1a5   : > { %v1867_v16 = vpop.permute.xlu1 %1866 }
 0x1a6   : > { %v1887_v33 = vsel %vm1884_vm2, %v1867_v16, %v1869_v8  ;;  %v915_v17 = vpop.permute.xlu0 %914 }
 0x1a7   : > { %2227 = vrot.lane.b32.xlu1 %v3975_v31, %s4068_s6  ;;  %v926_v47 = vsel %vm924_vm3, %v913_v43, %v915_v17  ;;  %940 = vst.msk [vmem:[#allocation2 + $0x258] sm:$0xff] %vm244_vm0, %v915_v17 }
 0x1a8   : > { %2225 = vrot.lane.b32.xlu0 %v4616_v21, %s4068_s6 }
 0x1a9   : > { %v1877_v9 = vpop.permute.xlu1 %1876 }
 0x1aa   : > { %v1875_v18 = vpop.permute.xlu0 %1874 }
 0x1ab   : > { %2231 = vrot.lane.b32.xlu1 %v4631_v2, %s4068_s6  ;;  %v1890_v19 = vsel %vm1884_vm2, %v1875_v18, %v1877_v9  ;;  %v2487_v6 = vld [vmem:[#allocation2 + $0x558] sm:$0xff] }
 0x1ac   : > { %1906 = vst.msk [vmem:[#allocation2 + $0x568] sm:$0xff] %vm244_vm0, %v1890_v19  ;;  %2223 = vrot.lane.b32.xlu0 %v4625_v3, %s4068_s6  ;;  %3211 = vmatprep.subr.bf16.mxu0 %v2487_v6 }
 0x1ad   : > { %v919_v20 = vpop.permute.xlu1 %918  ;;  %3212 = vmatpush1.bf16.msra.mxu0 %v1887_v33 }
 0x1ae   : > { %942 = vst.msk [vmem:[#allocation2 + $0x268] sm:$0xff] %vm244_vm0, %v919_v20  ;;  %v917_v21 = vpop.permute.xlu0 %916  ;;  %v2391_v22 = vld [vmem:[#allocation2 + $0x258] sm:$0xff] }
 0x1af   : > { %2229 = vrot.lane.b32.xlu1 %v4641_v32, %s4068_s6  ;;  %v927_v2 = vsel %vm924_vm3, %v917_v21, %v919_v20  ;;  %2992 = vmatprep.subr.bf16.mxu1 %v2391_v22 }
 0x1b0   : > { %2993 = vmatpush1.bf16.msra.mxu1 %v926_v47  ;;  %2233 = vrot.lane.b32.xlu0 %v3976_v7, %s4068_s6 }
 0x1b1   : > { %v1881_v23 = vpop.permute.xlu1 %1880 }
 0x1b2   : > { %v1873_v3 = vpop.permute.xlu0 %1872 }
 0x1b3   : > { %v1889_v57 = vsel %vm1884_vm2, %v1873_v3, %v1875_v18  ;;  %v2489_v53 = vld [vmem:[#allocation2 + $0x568] sm:$0xff]  ;;  %2551 = vperm.xlu1 %3898, %v2521_v36  }
 0x1b4   : > { %3213 = vmatprep.subr.bf16.mxu0 %v2489_v53  ;;  %2546 = vperm.xlu0 %3897, %v2520_v38  }
 0x1b5   : > { %v921_v25 = vpop.permute.xlu1 %920  ;;  %v2393_v26 = vld [vmem:[#allocation2 + $0x268] sm:$0xff]  ;;  %3214 = vmatpush1.bf16.msra.mxu0 %v1889_v57 }
 0x1b6   : > { %2994 = vmatprep.subr.bf16.mxu1 %v2393_v26  ;;  %v1883_v32 = vpop.permute.xlu0 %1882 }
 0x1b7   : > { %2995 = vmatpush1.bf16.msra.mxu1 %v927_v2  ;;  %v1892_v27 = vsel %vm1884_vm2, %v1881_v23, %v1883_v32  ;;  %2556 = vperm.xlu1 %3898, %v2522_v40  }
 0x1b8   : > { %1908 = vst.msk [vmem:[#allocation2 + $0x578] sm:$0xff] %vm244_vm0, %v1892_v27  ;;  %2561 = vperm.xlu0 %3897, %v2523_v44  }
 0x1b9   : > { %v1879_v28 = vpop.permute.xlu1 %1878 }
 0x1ba   : > { %v1891_v29 = vsel %vm1884_vm2, %v1879_v28, %v1881_v23  ;;  %v923_v30 = vpop.permute.xlu0 %922 }
 0x1bb   : > { %v928_v1 = vsel %vm924_vm3, %v921_v25, %v923_v30  ;;  %944 = vst.msk [vmem:[#allocation2 + $0x278] sm:$0xff] %vm244_vm0, %v923_v30  ;;  %2526 = vperm.xlu1 %3898, %v2516_v48  }
 0x1bc   : > { %2531 = vperm.xlu0 %3897, %v2517_v52  }
 0x1bd   : > { %v1982_v0 = vpop.permute.xlu1 %1981 }
 0x1be   : > { %v1980_v34 = vpop.permute.xlu0 %1979 }
 0x1bf   : > { %v2003_v35 = vsel %vm2001_vm4, %v1980_v34, %v1982_v0  ;;  %v2491_v5 = vld [vmem:[#allocation2 + $0x578] sm:$0xff]  ;;  %2536 = vperm.xlu1 %3898, %v2518_v56  }
 0x1c0   : > { %2019 = vst.msk [vmem:[#allocation2 + $0x588] sm:$0xff] %vm244_vm0, %v2003_v35  ;;  %3215 = vmatprep.subr.bf16.mxu0 %v2491_v5  ;;  %2541 = vperm.xlu0 %3897, %v2519_v61  }
 0x1c1   : > { %v988_v39 = vpop.permute.xlu1 %987  ;;  %3216 = vmatpush1.bf16.msra.mxu0 %v1891_v29 }
 0x1c2   : > { %1015 = vst.msk [vmem:[#allocation2 + $0x288] sm:$0xff] %vm244_vm0, %v988_v39  ;;  %v986_v41 = vpop.permute.xlu0 %985  ;;  %v2395_v42 = vld [vmem:[#allocation2 + $0x278] sm:$0xff] }
 0x1c3   : > { %v1002_v45 = vsel %vm1001_vm5, %v986_v41, %v988_v39  ;;  %2996 = vmatprep.subr.bf16.mxu1 %v2395_v42 }
 0x1c4   : > { %2997 = vmatpush1.bf16.msra.mxu1 %v928_v1 }
 0x1c5   : > { %v1986_v46 = vpop.permute.xlu1 %1985 }
 0x1c6   : > { %v1978_v49 = vpop.permute.xlu0 %1977 }
 0x1c7   : > { %v2002_v50 = vsel %vm2001_vm4, %v1978_v49, %v1980_v34  ;;  %v2493_v51 = vld [vmem:[#allocation2 + $0x588] sm:$0xff] }
 0x1c8   : > { %3217 = vmatprep.subr.bf16.mxu0 %v2493_v51 }
 0x1c9   : > { %v990_v54 = vpop.permute.xlu1 %989  ;;  %v2397_v55 = vld [vmem:[#allocation2 + $0x288] sm:$0xff]  ;;  %3218 = vmatpush1.bf16.msra.mxu0 %v2002_v50 }
 0x1ca   : > { %2998 = vmatprep.subr.bf16.mxu1 %v2397_v55  ;;  %v1988_v58 = vpop.permute.xlu0 %1987 }
 0x1cb   : > { %2999 = vmatpush1.bf16.msra.mxu1 %v1002_v45  ;;  %v2005_v60 = vsel %vm2001_vm4, %v1986_v46, %v1988_v58 }
 0x1cc   : > { %2021 = vst.msk [vmem:[#allocation2 + $0x598] sm:$0xff] %vm244_vm0, %v2005_v60 }
 0x1cd   : > { %v1984_v62 = vpop.permute.xlu1 %1983 }
 0x1ce   : > { %v2004_v37 = vsel %vm2001_vm4, %v1984_v62, %v1986_v46  ;;  %v992_v63 = vpop.permute.xlu0 %991 }
 0x1cf   : > { %v1003_v4 = vsel %vm1001_vm5, %v990_v54, %v992_v63  ;;  %1017 = vst.msk [vmem:[#allocation2 + $0x298] sm:$0xff] %vm244_vm0, %v992_v63 }
 0x1d1   : > { %v1994_v8 = vpop.permute.xlu1 %1993 }
 0x1d2   : > { %v1992_v10 = vpop.permute.xlu0 %1991 }
 0x1d3   : > { %v2007_v11 = vsel %vm2001_vm4, %v1992_v10, %v1994_v8  ;;  %v2495_v12 = vld [vmem:[#allocation2 + $0x598] sm:$0xff] }
 0x1d4   : > { %2023 = vst.msk [vmem:[#allocation2 + $0x5a8] sm:$0xff] %vm244_vm0, %v2007_v11  ;;  %3219 = vmatprep.subr.bf16.mxu0 %v2495_v12  ;;  %v3993_v11 = vld [vmem:[%s5019_s0 + $0x28] ss:$52 sps:$4 sm:$0xff]  }
 0x1d5   : > { %v996_v43 = vpop.permute.xlu1 %995  ;;  %3220 = vmatpush1.bf16.msra.mxu0 %v2004_v37  ;;  %v3999_v12 = vld [vmem:[%s5019_s0 + $0x94] ss:$52 sps:$4 sm:$0xff]  }
 0x1d6   : > { %1019 = vst.msk [vmem:[#allocation2 + $0x2a8] sm:$0xff] %vm244_vm0, %v996_v43  ;;  %v994_v13 = vpop.permute.xlu0 %993  ;;  %v2399_v14 = vld [vmem:[#allocation2 + $0x298] sm:$0xff] }
 0x1d7   : > { %v1004_v15 = vsel %vm1001_vm5, %v994_v13, %v996_v43  ;;  %3000 = vmatprep.subr.bf16.mxu1 %v2399_v14 }
 0x1d8   : > { %3001 = vmatpush1.bf16.msra.mxu1 %v1003_v4 }
 0x1d9   : > { %v1998_v31 = vpop.permute.xlu1 %1997 }
 0x1da   : > { %v1990_v59 = vpop.permute.xlu0 %1989 }
 0x1db   : > { %v2006_v16 = vsel %vm2001_vm4, %v1990_v59, %v1992_v10  ;;  %v2497_v33 = vld [vmem:[#allocation2 + $0x5a8] sm:$0xff] }
 0x1dc   : > { %3221 = vmatprep.subr.bf16.mxu0 %v2497_v33  ;;  %v4001_v33 = vld [vmem:[%s5019_s0 + $0x7c] ss:$52 sps:$4 sm:$0xff]  }
 0x1dd   : > { %v998_v17 = vpop.permute.xlu1 %997  ;;  %v2401_v47 = vld [vmem:[#allocation2 + $0x2a8] sm:$0xff]  ;;  %3222 = vmatpush1.bf16.msra.mxu0 %v2006_v16 }
 0x1de   : > { %3002 = vmatprep.subr.bf16.mxu1 %v2401_v47  ;;  %v2000_v9 = vpop.permute.xlu0 %1999 }
 0x1df   : > { %3003 = vmatpush1.bf16.msra.mxu1 %v1004_v15  ;;  %v2009_v18 = vsel %vm2001_vm4, %v1998_v31, %v2000_v9  ;;  %v3996_v15 = vld [vmem:[%s5019_s0 + $0x10] ss:$52 sps:$4 sm:$0xff]  }
 0x1e0   : > { %2025 = vst.msk [vmem:[#allocation2 + $0x5b8] sm:$0xff] %vm244_vm0, %v2009_v18  ;;  %v4004_v18 = vld [vmem:[%s5019_s0 + $0x90] ss:$52 sps:$4 sm:$0xff]  }
 0x1e1   : > { %v1996_v19 = vpop.permute.xlu1 %1995 }
 0x1e2   : > { %v2008_v6 = vsel %vm2001_vm4, %v1996_v19, %v1998_v31  ;;  %v1000_v20 = vpop.permute.xlu0 %999  ;;  %v4007_v19 = vld [vmem:[%s5019_s0 + $0xfc] ss:$52 sps:$4 sm:$0xff]  }
 0x1e3   : > { %v1005_v7 = vsel %vm1001_vm5, %v998_v17, %v1000_v20  ;;  %1021 = vst.msk [vmem:[#allocation2 + $0x2b8] sm:$0xff] %vm244_vm0, %v1000_v20 }
 0x1e5   : > { %v2099_v21 = vpop.permute.xlu1 %2098 }
 0x1e6   : > { %v2097_v22 = vpop.permute.xlu0 %2096 }
 0x1e7   : > { %v2120_v2 = vsel %vm2118_vm6, %v2097_v22, %v2099_v21  ;;  %v2499_v23 = vld [vmem:[#allocation2 + $0x5b8] sm:$0xff] }
 0x1e8   : > { %2136 = vst.msk [vmem:[#allocation2 + $0x5c8] sm:$0xff] %vm244_vm0, %v2120_v2  ;;  %3223 = vmatprep.subr.bf16.mxu0 %v2499_v23  ;;  %v4005_v2 = vld [vmem:[%s5019_s0 + $0xe4] ss:$52 sps:$4 sm:$0xff]  }
 0x1e9   : > { %v1065_v3 = vpop.permute.xlu1 %1064  ;;  %3224 = vmatpush1.bf16.msra.mxu0 %v2008_v6 }
 0x1ea   : > { %1092 = vst.msk [vmem:[#allocation2 + $0x2c8] sm:$0xff] %vm244_vm0, %v1065_v3  ;;  %v1063_v57 = vpop.permute.xlu0 %1062  ;;  %v2403_v53 = vld [vmem:[#allocation2 + $0x2b8] sm:$0xff] }
 0x1eb   : > { %v1079_v25 = vsel %vm1078_vm7, %v1063_v57, %v1065_v3  ;;  %3004 = vmatprep.subr.bf16.mxu1 %v2403_v53  ;;  %v4010_v53 = vld [vmem:[%s5019_s0 + $0xf8] ss:$52 sps:$4 sm:$0xff]  }
 0x1ec   : > { %3005 = vmatpush1.bf16.msra.mxu1 %v1005_v7  ;;  %v4003_v7 = vld [vmem:[%s5019_s0 + $0x78] ss:$52 sps:$4 sm:$0xff]  }
 0x1ed   : > { %v2103_v26 = vpop.permute.xlu1 %2102 }
 0x1ee   : > { %v2095_v32 = vpop.permute.xlu0 %2094 }
 0x1ef   : > { %v2119_v27 = vsel %vm2118_vm6, %v2095_v32, %v2097_v22  ;;  %v2501_v28 = vld [vmem:[#allocation2 + $0x5c8] sm:$0xff]  ;;  %v4013_v32 = vld [vmem:[%s5019_s0 + $0x164] ss:$52 sps:$4 sm:$0xff]  }
 0x1f0   : > { %3225 = vmatprep.subr.bf16.mxu0 %v2501_v28  ;;  %v4009_v28 = vld [vmem:[%s5019_s0 + $0xe0] ss:$52 sps:$4 sm:$0xff]  }
 0x1f1   : > { %v1067_v29 = vpop.permute.xlu1 %1066  ;;  %v2405_v30 = vld [vmem:[#allocation2 + $0x2c8] sm:$0xff]  ;;  %3226 = vmatpush1.bf16.msra.mxu0 %v2119_v27 }
 0x1f2   : > { %3006 = vmatprep.subr.bf16.mxu1 %v2405_v30  ;;  %v2105_v1 = vpop.permute.xlu0 %2104  ;;  %v4011_v30 = vld [vmem:[%s5019_s0 + $0x14c] ss:$52 sps:$4 sm:$0xff]  }
 0x1f3   : > { %3007 = vmatpush1.bf16.msra.mxu1 %v1079_v25  ;;  %v2122_v0 = vsel %vm2118_vm6, %v2103_v26, %v2105_v1  ;;  %v4016_v1 = vld [vmem:[%s5019_s0 + $0x160] ss:$52 sps:$4 sm:$0xff]  }
 0x1f4   : > { %2138 = vst.msk [vmem:[#allocation2 + $0x5d8] sm:$0xff] %vm244_vm0, %v2122_v0  ;;  %v4015_v0 = vld [vmem:[%s5019_s0 + $0x148] ss:$52 sps:$4 sm:$0xff]  }
 0x1f5   : > { %v2101_v34 = vpop.permute.xlu1 %2100 }
 0x1f6   : > { %v2121_v35 = vsel %vm2118_vm6, %v2101_v34, %v2103_v26  ;;  %v1069_v5 = vpop.permute.xlu0 %1068 }
 0x1f7   : > { %v1080_v36 = vsel %vm1078_vm7, %v1067_v29, %v1069_v5  ;;  %1094 = vst.msk [vmem:[#allocation2 + $0x2d8] sm:$0xff] %vm244_vm0, %v1069_v5  ;;  %v4018_v5 = vld [vmem:[%s5019_s0 + $0x100] ss:$52 sps:$4 sm:$0xff]  }
 0x1f9   : > { %v2111_v38 = vpop.permute.xlu1 %2110 }
 0x1fa   : > { %v2109_v39 = vpop.permute.xlu0 %2108 }
 0x1fb   : > { %v2124_v40 = vsel %vm2118_vm6, %v2109_v39, %v2111_v38  ;;  %v2503_v41 = vld [vmem:[#allocation2 + $0x5d8] sm:$0xff] }
 0x1fc   : > { %2140 = vst.msk [vmem:[#allocation2 + $0x5e8] sm:$0xff] %vm244_vm0, %v2124_v40  ;;  %3227 = vmatprep.subr.bf16.mxu0 %v2503_v41  ;;  %v4020_v38 = vld [vmem:[%s5019_s0 + $0x168] ss:$52 sps:$4 sm:$0xff]  }
 0x1fd   : > { %v1073_v42 = vpop.permute.xlu1 %1072  ;;  %3228 = vmatpush1.bf16.msra.mxu0 %v2121_v35  ;;  %v4017_v35 = vld [vmem:[%s5019_s0 + $0x30] ss:$52 sps:$4 sm:$0xff]  }
 0x1fe   : > { %1096 = vst.msk [vmem:[#allocation2 + $0x2e8] sm:$0xff] %vm244_vm0, %v1073_v42  ;;  %v1071_v44 = vpop.permute.xlu0 %1070  ;;  %v2407_v45 = vld [vmem:[#allocation2 + $0x2d8] sm:$0xff] }
 0x1ff   : > { %v1081_v46 = vsel %vm1078_vm7, %v1071_v44, %v1073_v42  ;;  %3008 = vmatprep.subr.bf16.mxu1 %v2407_v45 }
 0x200   : > { %3009 = vmatpush1.bf16.msra.mxu1 %v1080_v36  ;;  %v4019_v36 = vld [vmem:[%s5019_s0 + $0x98] ss:$52 sps:$4 sm:$0xff]  }
 0x201   : > { %v2115_v48 = vpop.permute.xlu1 %2114 }
 0x202   : > { %v2107_v49 = vpop.permute.xlu0 %2106 }
 0x203   : > { %v2123_v50 = vsel %vm2118_vm6, %v2107_v49, %v2109_v39  ;;  %v2505_v51 = vld [vmem:[#allocation2 + $0x5e8] sm:$0xff] }
 0x204   : > { %3229 = vmatprep.subr.bf16.mxu0 %v2505_v51 }
 0x205   : > { %v1075_v52 = vpop.permute.xlu1 %1074  ;;  %v2409_v54 = vld [vmem:[#allocation2 + $0x2e8] sm:$0xff]  ;;  %3230 = vmatpush1.bf16.msra.mxu0 %v2123_v50 }
 0x206   : > { %3010 = vmatprep.subr.bf16.mxu1 %v2409_v54  ;;  %v2117_v55 = vpop.permute.xlu0 %2116 }
 0x207   : > { %3011 = vmatpush1.bf16.msra.mxu1 %v1081_v46  ;;  %v2126_v56 = vsel %vm2118_vm6, %v2115_v48, %v2117_v55 }
 0x208   : > { %2142 = vst.msk [vmem:[#allocation2 + $0x5f8] sm:$0xff] %vm244_vm0, %v2126_v56 }
 0x209   : > { %v2113_v58 = vpop.permute.xlu1 %2112 }
 0x20a   : > { %v2125_v60 = vsel %vm2118_vm6, %v2113_v58, %v2115_v48  ;;  %v1077_v61 = vpop.permute.xlu0 %1076 }
 0x20b   : > { %v1082_v62 = vsel %vm1078_vm7, %v1075_v52, %v1077_v61  ;;  %1098 = vst.msk [vmem:[#allocation2 + $0x2f8] sm:$0xff] %vm244_vm0, %v1077_v61 }
 0x20d   : > { %v2216_v37 = vpop.permute.xlu1 %2215 }
 0x20e   : > { %v2214_v63 = vpop.permute.xlu0 %2213 }
 0x20f   : > { %v2237_v4 = vsel %vm2235_vm8, %v2214_v63, %v2216_v37  ;;  %v2507_v8 = vld [vmem:[#allocation2 + $0x5f8] sm:$0xff] }
 0x210   : > { %2253 = vst.msk [vmem:[#allocation2 + $0x608] sm:$0xff] %vm244_vm0, %v2237_v4  ;;  %3231 = vmatprep.subr.bf16.mxu0 %v2507_v8 }
 0x211   : > { %v2220_v10 = vpop.permute.xlu1 %2219  ;;  %3232 = vmatpush1.bf16.msra.mxu0 %v2125_v60 }
 0x212   : > { %v2212_v43 = vpop.permute.xlu0 %2211  ;;  %v2411_v13 = vld [vmem:[#allocation2 + $0x2f8] sm:$0xff] }
 0x213   : > { %v2236_v14 = vsel %vm2235_vm8, %v2212_v43, %v2214_v63  ;;  %3012 = vmatprep.subr.bf16.mxu1 %v2411_v13 }
 0x214   : > { %3013 = vmatpush1.bf16.msra.mxu1 %v1082_v62  ;;  %3234 = vmatmul.mubr.bf16.vlgmr.msra.gmra.mrb[0].mxu0 %v3993_v11 }
 0x215   : > { %v2218_v31 = vpop.permute.xlu1 %2217  ;;  %3243 = vmatprep.mubr.bf16.mxu0 %v3999_v12 }
 0x216   : > { %v2238_v59 = vsel %vm2235_vm8, %v2218_v31, %v2220_v10  ;;  %v2222_v16 = vpop.permute.xlu0 %2221 }
 0x217   : > { %v2239_v17 = vsel %vm2235_vm8, %v2220_v10, %v2222_v16  ;;  %3015 = vmatmul.mubr.bf16.vlgmr.msra.gmra.mrb[0].mxu1 %v3996_v15  ;;  %v2509_v47 = vld [vmem:[#allocation2 + $0x608] sm:$0xff] }
 0x218   : > { %2255 = vst.msk [vmem:[#allocation2 + $0x618] sm:$0xff] %vm244_vm0, %v2239_v17  ;;  %3274 = vmatprep.subr.bf16.mxu0 %v2509_v47  ;;  %3727 = vmatprep.subr.bf16.mxu1 %v2509_v47 }
 0x219   : > { %v2228_v9 = vpop.permute.xlu1 %2227  ;;  %3275 = vmatpush1.bf16.msra.mxu0 %v2236_v14  ;;  %3731 = vmatpush1.bf16.msra.mxu1 %v2236_v14 }
 0x21a   : > { %v2226_v6 = vpop.permute.xlu0 %2225  ;;  %3024 = vmatprep.mubr.bf16.mxu1 %v4001_v33 }
 0x21b   : > { %v2241_v20 = vsel %vm2235_vm8, %v2226_v6, %v2228_v9 }
 0x21c   : > { %2257 = vst.msk [vmem:[#allocation2 + $0x628] sm:$0xff] %vm244_vm0, %v2241_v20  ;;  %3244 = vmatmul.mubr.bf16.gmra.mrb[4].mxu0 %v4004_v18 }
 0x21d   : > { %v2232_v21 = vpop.permute.xlu1 %2231  ;;  %3253 = vmatprep.mubr.bf16.mxu0 %v4007_v19 }
 0x21e   : > { %v2224_v22 = vpop.permute.xlu0 %2223 }
 0x21f   : > { %v2240_v23 = vsel %vm2235_vm8, %v2224_v22, %v2226_v6  ;;  %3025 = vmatmul.mubr.bf16.gmra.mrb[4].mxu1 %v4003_v7  ;;  %v2511_v3 = vld [vmem:[#allocation2 + $0x618] sm:$0xff] }
 0x220   : > { %3276 = vmatprep.subr.bf16.mxu0 %v2511_v3  ;;  %3728 = vmatprep.subr.bf16.mxu1 %v2511_v3 }
 0x221   : > { %v2230_v57 = vpop.permute.xlu1 %2229  ;;  %3277 = vmatpush1.bf16.msra.mxu0 %v2238_v59  ;;  %3732 = vmatpush1.bf16.msra.mxu1 %v2238_v59 }
 0x222   : > { %v2242_v25 = vsel %vm2235_vm8, %v2230_v57, %v2232_v21  ;;  %v2234_v26 = vpop.permute.xlu0 %2233  ;;  %3034 = vmatprep.mubr.bf16.mxu1 %v4005_v2 }
 0x223   : > { %v2243_v27 = vsel %vm2235_vm8, %v2232_v21, %v2234_v26  ;;  %v2513_v29 = vld [vmem:[#allocation2 + $0x628] sm:$0xff] }
 0x224   : > { %2259 = vst.msk [vmem:[#allocation2 + $0x638] sm:$0xff] %vm244_vm0, %v2243_v27  ;;  %3254 = vmatmul.mubr.bf16.gmra.mrb[8].mxu0 %v4010_v53  ;;  %3278 = vmatprep.subr.bf16.mxu0 %v2513_v29 }
 0x225   : > { %3729 = vmatprep.subr.bf16.mxu1 %v2513_v29  ;;  %3279 = vmatpush1.bf16.msra.mxu0 %v2240_v23 }
 0x226   : > { %3733 = vmatpush1.bf16.msra.mxu1 %v2240_v23  ;;  %3263 = vmatprep.mubr.bf16.mxu0 %v4013_v32 }
 0x227   : > { %3035 = vmatmul.mubr.bf16.gmra.mrb[8].mxu1 %v4009_v28 }
 0x228   : > { %3044 = vmatprep.mubr.bf16.mxu1 %v4011_v30 }
 0x22b   : > { %v2515_v34 = vld [vmem:[#allocation2 + $0x638] sm:$0xff] }
 0x22c   : > { %3264 = vmatmul.mubr.bf16.gmra.mrb[12].mxu0 %v4016_v1  ;;  %3280 = vmatprep.subr.bf16.mxu0 %v2515_v34 }
 0x22d   : > { %3730 = vmatprep.subr.bf16.mxu1 %v2515_v34  ;;  %3281 = vmatpush1.bf16.msra.mxu0 %v2242_v25 }
 0x22e   : > { %3734 = vmatpush1.bf16.msra.mxu1 %v2242_v25  ;;  %3306 = vmatprep.mubr.bf16.mxu0 %v4069_v24 }
 0x22f   : > { %3045 = vmatmul.mubr.bf16.gmra.mrb[12].mxu1 %v4015_v0 }
 0x230   : > { %3326 = vmatprep.mubr.bf16.mxu1 %v4069_v24 }
 0x232   : > { %v2552_v48 = vpop.permute.xlu1 %2551 }
 0x233   : > { %v2547_v51 = vpop.permute.xlu0 %2546 }
 0x234   : > { %3720 = vmatmul.mubr.msk.bf16.vlgmr.msra.gmra.mrb[0].mxu0 %vm244_vm0, %v4017_v35 }
 0x235   : > { %3316 = vmatprep.mubr.bf16.mxu0 %v4069_v24 }
 0x236   : > { %v2557_v62 = vpop.permute.xlu1 %2556 }
 0x237   : > { %3722 = vmatmul.mubr.msk.bf16.vlgmr.msra.gmra.mrb[16].mxu1 %vm244_vm0, %v4018_v5  ;;  %v2562_v11 = vpop.permute.xlu0 %2561 }
 0x238   : > { %3336 = vmatprep.mubr.bf16.mxu1 %v4069_v24 }
 0x23a   : > { %v2527_v16 = vpop.permute.xlu1 %2526 }
 0x23b   : > { %v2532_v18 = vpop.permute.xlu0 %2531 }
 0x23c   : > { %3721 = vmatmul.mubr.msk.bf16.gmra.mrb[4].mxu0 %vm244_vm0, %v4019_v36 }
 0x23e   : > { %v2537_v0 = vpop.permute.xlu1 %2536 }
 0x23f   : > { %3723 = vmatmul.mubr.msk.bf16.gmra.mrb[20].mxu1 %vm244_vm0, %v4020_v38 }
 0x2ea   : > { %v3016_v39 = vpop.f32.mrb[0].mxu1 }
 0x2eb   : > { %v3018_v40 = vpop.f32.mrb[1].mxu1  ;;  %v3735_v7 = vadd.f32 %v3016_v39, %v2527_v16  ;;  %v2542_v39 = vpop.permute.xlu0 %2541 }
 0x2ec   : > { %v3020_v41 = vpop.f32.mrb[2].mxu1  ;;  %v3737_v2 = vadd.f32 %v3018_v40, %v2527_v16 }
 0x2ed   : > { %v3022_v42 = vpop.f32.mrb[3].mxu1  ;;  %v3739_v57 = vadd.f32 %v3020_v41, %v2532_v18 }
 0x2ee   : > { %v3741_v32 = vadd.f32 %v3022_v42, %v2532_v18 }
 0x2f2   : > { %v4968_v44 = vpop.f32.mrb[4].mxu1 }
 0x2f3   : > { %v4970_v45 = vpop.f32.mrb[5].mxu1  ;;  %v3743_v42 = vadd.f32 %v4968_v44, %v2537_v0 }
 0x2f4   : > { %v4972_v24 = vpop.f32.mrb[6].mxu1 }
 0x2f5   : > { %v4974_v46 = vpop.f32.mrb[7].mxu1 }
 0x2f7   : > { %v3255_v49 = vpop.f32.mrb[8].mxu0 }
 0x2f8   : > { %v3257_v50 = vpop.f32.mrb[9].mxu0 }
 0x2f9   : > { %v3259_v52 = vpop.f32.mrb[10].mxu0 }
 0x2fa   : > { %v3036_v54 = vpop.f32.mrb[8].mxu1  ;;  %v3261_v55 = vpop.f32.mrb[11].mxu0 }
 0x2fb   : > { %v3751_v56 = vadd.f32 %v3036_v54, %v2547_v51  ;;  %v3038_v58 = vpop.f32.mrb[9].mxu1 }
 0x2fc   : > { %v3754_v60 = vadd.f32 %v3038_v58, %v2547_v51  ;;  %v3040_v61 = vpop.f32.mrb[10].mxu1  ;;  %v3747_v51 = vadd.f32 %v4972_v24, %v2542_v39 }
 0x2fd   : > { %v3752_v37 = vadd.f32 %v3751_v56, %v3255_v49  ;;  %v3757_v63 = vadd.f32 %v3040_v61, %v2552_v48  ;;  %v3042_v4 = vpop.f32.mrb[11].mxu1  ;;  %v3745_v49 = vadd.f32 %v4970_v45, %v2537_v0 }
 0x2fe   : > { %v3755_v8 = vadd.f32 %v3754_v60, %v3257_v50  ;;  %v3760_v10 = vadd.f32 %v3042_v4, %v2552_v48 }
 0x2ff   : > { %v3758_v12 = vadd.f32 %v3757_v63, %v3259_v52  ;;  %v3265_v43 = vpop.f32.mrb[12].mxu0 }
 0x300   : > { %v3761_v13 = vadd.f32 %v3760_v10, %v3261_v55  ;;  %v3267_v14 = vpop.f32.mrb[13].mxu0  ;;  %v3749_v55 = vadd.f32 %v4974_v46, %v2542_v39 }
 0x301   : > { %v3269_v15 = vpop.f32.mrb[14].mxu0 }
 0x302   : > { %v3046_v31 = vpop.f32.mrb[12].mxu1  ;;  %v3271_v59 = vpop.f32.mrb[15].mxu0 }
 0x303   : > { %v3763_v33 = vadd.f32 %v3046_v31, %v2557_v62  ;;  %v3048_v17 = vpop.f32.mrb[13].mxu1 }
 0x304   : > { %v3766_v47 = vadd.f32 %v3048_v17, %v2557_v62  ;;  %v3050_v9 = vpop.f32.mrb[14].mxu1 }
 0x305   : > { %v3764_v19 = vadd.f32 %v3763_v33, %v3265_v43  ;;  %v3769_v6 = vadd.f32 %v3050_v9, %v2562_v11  ;;  %v3052_v20 = vpop.f32.mrb[15].mxu1 }
 0x306   : > { %v3767_v21 = vadd.f32 %v3766_v47, %v3267_v14  ;;  %v3772_v22 = vadd.f32 %v3052_v20, %v2562_v11 }
 0x307   : > { %v3770_v23 = vadd.f32 %v3769_v6, %v3269_v15  ;;  %v3308_v3 = vpop.f32.mrb[0].mxu0 }
 0x308   : > { %v3773_v53 = vadd.f32 %v3772_v22, %v3271_v59  ;;  %v3736_v25 = vadd.f32 %v3735_v7, %v3308_v3  ;;  %v3310_v26 = vpop.f32.mrb[1].mxu0 }
 0x309   : > { %v3738_v27 = vadd.f32 %v3737_v2, %v3310_v26  ;;  %v3312_v28 = vpop.f32.mrb[2].mxu0 }
 0x30a   : > { %3347 = vst [vmem:[%s4980_s11] sm:$0xff] %v3736_v25  ;;  %v3328_v29 = vpop.f32.mrb[16].mxu1  ;;  %v3740_v30 = vadd.f32 %v3739_v57, %v3312_v28  ;;  %v3314_v1 = vpop.f32.mrb[3].mxu0 }
 0x30b   : > { %v3753_v34 = vadd.f32 %v3752_v37, %v3328_v29  ;;  %3348 = vst.msk [vmem:[%s4980_s11 + $0x8] sm:$0xff] %vm244_vm0, %v3738_v27  ;;  %v3330_v35 = vpop.f32.mrb[17].mxu1  ;;  %v3742_v5 = vadd.f32 %v3741_v32, %v3314_v1 }
 0x30c   : > { %v3756_v36 = vadd.f32 %v3755_v8, %v3330_v35  ;;  %3349 = vst [vmem:[%s4980_s11 + $0x10] sm:$0xff] %v3740_v30  ;;  %v3332_v38 = vpop.f32.mrb[18].mxu1 }
 0x30d   : > { %3355 = vst [vmem:[%s4980_s11 + $0x40] sm:$0xff] %v3753_v34  ;;  %v3759_v40 = vadd.f32 %v3758_v12, %v3332_v38  ;;  %3350 = vst.msk [vmem:[%s4980_s11 + $0x18] sm:$0xff] %vm244_vm0, %v3742_v5  ;;  %v3334_v41 = vpop.f32.mrb[19].mxu1 }
 0x30e   : > { %3356 = vst.msk [vmem:[%s4980_s11 + $0x48] sm:$0xff] %vm244_vm0, %v3756_v36  ;;  %v3762_v48 = vadd.f32 %v3761_v13, %v3334_v41 }
 0x30f   : > { %3357 = vst [vmem:[%s4980_s11 + $0x50] sm:$0xff] %v3759_v40  ;;  %v3318_v50 = vpop.f32.mrb[4].mxu0 }
 0x310   : > { %3358 = vst.msk [vmem:[%s4980_s11 + $0x58] sm:$0xff] %vm244_vm0, %v3762_v48  ;;  %v3744_v52 = vadd.f32 %v3743_v42, %v3318_v50  ;;  %v3320_v54 = vpop.f32.mrb[5].mxu0 }
 0x311   : > { %v3746_v44 = vadd.f32 %v3745_v49, %v3320_v54  ;;  %v3322_v56 = vpop.f32.mrb[6].mxu0 }
 0x312   : > { %3351 = vst [vmem:[%s4980_s11 + $0x20] sm:$0xff] %v3744_v52  ;;  %v3338_v58 = vpop.f32.mrb[20].mxu1  ;;  %v3748_v45 = vadd.f32 %v3747_v51, %v3322_v56  ;;  %v3324_v60 = vpop.f32.mrb[7].mxu0 }
 0x313   : > { %v3765_v61 = vadd.f32 %v3764_v19, %v3338_v58  ;;  %3352 = vst.msk [vmem:[%s4980_s11 + $0x28] sm:$0xff] %vm244_vm0, %v3746_v44  ;;  %v3340_v24 = vpop.f32.mrb[21].mxu1  ;;  %v3750_v62 = vadd.f32 %v3749_v55, %v3324_v60 }
 0x314   : > { %v3768_v37 = vadd.f32 %v3767_v21, %v3340_v24  ;;  %3353 = vst [vmem:[%s4980_s11 + $0x30] sm:$0xff] %v3748_v45  ;;  %v3342_v63 = vpop.f32.mrb[22].mxu1 }
 0x315   : > { %3359 = vst [vmem:[%s4980_s11 + $0x60] sm:$0xff] %v3765_v61  ;;  %v3771_v46 = vadd.f32 %v3770_v23, %v3342_v63  ;;  %3354 = vst.msk [vmem:[%s4980_s11 + $0x38] sm:$0xff] %vm244_vm0, %v3750_v62  ;;  %v3344_v4 = vpop.f32.mrb[23].mxu1 }
 0x316   : > { %3360 = vst.msk [vmem:[%s4980_s11 + $0x68] sm:$0xff] %vm244_vm0, %v3768_v37  ;;  %v3774_v8 = vadd.f32 %v3773_v53, %v3344_v4 }
 0x317   : > { %3361 = vst [vmem:[%s4980_s11 + $0x70] sm:$0xff] %v3771_v46 }
 0x318   : > { %3362 = vst.msk [vmem:[%s4980_s11 + $0x78] sm:$0xff] %vm244_vm0, %v3774_v8 }
 0x319 PF: > { %s13_s14 = sadd.s32 1, %s4043_s14   ;;  %s5023_s12 = smov %s4039_s13 }
 0x31a   : > { %p10_p5 = scmp.ge.s32.totalorder %s13_s14, 4   ;;  %s5024_s13 = smov %s5026_s15 }
 0x31c   :  { %12 = sbr.rel (!%p10_p5) target bundleno = 2 (0x2), region = 62 }

</bundles_post_ra>
